<compile_context>
chip_gen: v7x
topology: tpu7x:2x2x1
jax: 0.10.0
libtpu: 0.0.40
codegen_flags: <defaults>
</compile_context>

<pallas_src>
import functools

import jax
import jax.numpy as jnp
import numpy as np
from jax.experimental import pallas as pl
from jax.experimental.pallas import tpu as pltpu


def _round_up(x, m):
    return (x + m - 1) // m * m


# ----------------------------------------------------------------------------
# plain-JAX glue: F.grid_sample(mode='bilinear', padding_mode='border',
# align_corners=False) for 4-D NCHW inputs, producing channel-LAST output so
# no per-corner transposes are needed.
# ----------------------------------------------------------------------------
def grid_sample_border_nhwc(img, grid):
    # img: (B, C, H, W), grid: (B, Hg, Wg, 2) in [-1, 1] (x, y) order.
    # returns (B, Hg, Wg, C) float32 (channel-last).
    B, C, H, W = img.shape
    gx = grid[..., 0]
    gy = grid[..., 1]
    # align_corners=False un-normalization
    ix = ((gx + 1.0) * W - 1.0) * 0.5
    iy = ((gy + 1.0) * H - 1.0) * 0.5
    # padding_mode='border' -> clamp coordinates
    ix = jnp.clip(ix, 0.0, W - 1.0)
    iy = jnp.clip(iy, 0.0, H - 1.0)

    x0 = jnp.floor(ix)
    y0 = jnp.floor(iy)
    x1 = x0 + 1.0
    y1 = y0 + 1.0
    wx1 = ix - x0
    wx0 = 1.0 - wx1
    wy1 = iy - y0
    wy0 = 1.0 - wy1

    x0i = jnp.clip(x0, 0, W - 1).astype(jnp.int32)
    x1i = jnp.clip(x1, 0, W - 1).astype(jnp.int32)
    y0i = jnp.clip(y0, 0, H - 1).astype(jnp.int32)
    y1i = jnp.clip(y1, 0, H - 1).astype(jnp.int32)

    bidx = jnp.arange(B)[:, None, None]

    def gather(yi, xi):
        return img[bidx, :, yi, xi]        # (B, Hg, Wg, C), channel-last

    v00 = gather(y0i, x0i)
    v01 = gather(y0i, x1i)
    v10 = gather(y1i, x0i)
    v11 = gather(y1i, x1i)

    w00 = (wy0 * wx0)[..., None]
    w01 = (wy0 * wx1)[..., None]
    w10 = (wy1 * wx0)[..., None]
    w11 = (wy1 * wx1)[..., None]
    return w00 * v00 + w01 * v01 + w10 * v10 + w11 * v11


# ----------------------------------------------------------------------------
# spatial tiling: pad S only to a multiple of 128, pick T as the largest
# divisor of S128 that fits the tile cap; split once more if the parallel grid
# would otherwise have a single step (v7x megacore).
# ----------------------------------------------------------------------------
def _pick_spatial_tiling(S, tile_cap, batch):
    S128 = _round_up(S, 128)
    n128 = S128 // 128
    cap128 = max(tile_cap // 128, 1)
    num_s = 1
    while (n128 % num_s != 0) or (n128 // num_s) > cap128:
        num_s += 1
    if batch * num_s < 2 and n128 >= 2:
        num_s += 1
        while n128 % num_s != 0:
            num_s += 1
    T = (n128 // num_s) * 128
    return S128, T, num_s


# ----------------------------------------------------------------------------
# Pallas kernel.  One grid step handles all N neighbors of one (batch,
# spatial-tile): group correlation fused with conv0 (mean folded into w0),
# conv1, 8->1 similarity, sigmoid.  All matmul operands are bf16 with f32
# accumulation; the 9 logit rows are stored together once per tile.
# ----------------------------------------------------------------------------
def _fwnet_kernel(ref_ref, xs_ref, w0_ref, b0_ref, w1_ref, b1_ref,
                  w2_ref, b2_ref, out_ref):
    ref = ref_ref[0]                              # (C, T) bf16, resident
    n_neighbors = xs_ref.shape[1]

    rows = []
    for n in range(n_neighbors):                  # static unroll (N = 9)
        # group-wise correlation fused with conv0: the 1/Cg mean is folded
        # into w0_exp, so a single K=C bf16 matmul replaces reduce + K=G dot.
        prod = xs_ref[0, n] * ref                 # (C, T) bf16

        h = jnp.dot(w0_ref[...], prod,
                    preferred_element_type=jnp.float32)
        h = jnp.maximum(h + b0_ref[...], 0.0).astype(jnp.bfloat16)   # (16, T)

        h = jnp.dot(w1_ref[...], h,
                    preferred_element_type=jnp.float32)
        h = jnp.maximum(h + b1_ref[...], 0.0).astype(jnp.bfloat16)   # (8, T)

        # similarity layer (8 -> 1) on the MXU (matmul slot has slack)
        logit = jnp.dot(w2_ref[...], h,
                        preferred_element_type=jnp.float32) + b2_ref[...]
        rows.append(logit)                        # (1, T) f32

    logits = jnp.concatenate(rows, axis=0)        # (N, T) f32
    out_ref[0] = jax.nn.sigmoid(logits).astype(out_ref.dtype)


def feature_weight_net(ref_feature, grid, params, *, neighbors=9, G=8,
                       tile_s=16384):
    """Pallas-backed forward of FeatureWeightNet.

    ref_feature : (B, C, H, W)  float32, C % G == 0
    grid        : (B, neighbors * H, W, 2)
    returns     : (B, neighbors, H, W)  bfloat16
    """
    B, C, H, W = ref_feature.shape
    Cg = C // G
    S = H * W
    N = neighbors
    w0, b0, w1, b1, w2, b2 = params

    # ---- plain-JAX glue: grid_sample gather (channel-last) -----------------
    xs_nhwc = grid_sample_border_nhwc(ref_feature, grid)   # (B, N*H, W, C) f32

    S128, T, num_s = _pick_spatial_tiling(S, tile_s, B)

    # ---- kernel-facing layouts: one bf16 transpose, pad fused --------------
    xs_k = xs_nhwc.astype(jnp.bfloat16).reshape(B, N, S, C)
    if S128 != S:
        xs_k = jnp.pad(xs_k, ((0, 0), (0, 0), (0, S128 - S), (0, 0)))
    xs_k = jnp.transpose(xs_k, (0, 1, 3, 2))                # (B, N, C, S128)

    ref_k = ref_feature.astype(jnp.bfloat16).reshape(B, C, S)
    if S128 != S:
        ref_k = jnp.pad(ref_k, ((0, 0), (0, 0), (0, S128 - S)))

    # fold the mean over Cg into conv0: w0_exp[o, g*Cg + c] = w0[o, g] / Cg
    w0_exp = (jnp.repeat(w0, Cg, axis=1) / float(Cg)).astype(jnp.bfloat16)
    w1_k = w1.astype(jnp.bfloat16)
    w2_k = w2.astype(jnp.bfloat16)                          # (1, 8)

    out = pl.pallas_call(
        _fwnet_kernel,
        out_shape=jax.ShapeDtypeStruct((B, N, S128), jnp.bfloat16),
        grid_spec=pltpu.PrefetchScalarGridSpec(
            num_scalar_prefetch=0,
            grid=(B, num_s),
            in_specs=[
                # ref: (C, T) slab, channels on sublanes, spatial on lanes
                pl.BlockSpec((1, C, T), lambda b, s: (b, 0, s)),
                # xs: all N neighbors of this spatial tile in one block;
                # N is a leading dim so per-n slices need no relayout.
                # (pipeline_mode=pl.Buffered(3) is an optional further sweep.)
                pl.BlockSpec((1, N, C, T), lambda b, s: (b, 0, 0, s)),
                pl.BlockSpec((16, C), lambda b, s: (0, 0)),
                pl.BlockSpec((16, 1), lambda b, s: (0, 0)),
                pl.BlockSpec((8, 16), lambda b, s: (0, 0)),
                pl.BlockSpec((8, 1), lambda b, s: (0, 0)),
                pl.BlockSpec((1, 8), lambda b, s: (0, 0)),
                pl.BlockSpec((1, 1), lambda b, s: (0, 0)),
            ],
            out_specs=pl.BlockSpec((1, N, T), lambda b, s: (b, 0, s)),
        ),
        compiler_params=pltpu.CompilerParams(
            dimension_semantics=("parallel", "parallel"),
            vmem_limit_bytes=32 * 1024 * 1024),
    )(ref_k, xs_k, w0_exp, b0, w1_k, b1, w2_k, b2)

    return out[:, :, :S].reshape(B, N, H, W)


# ----------------------------------------------------------------------------
# Deterministic parameter construction (Conv3d 1x1x1 weights + folded BN).
# ----------------------------------------------------------------------------
def make_params(key, G=8):
    ks = jax.random.split(key, 12)
    eps = 1e-5

    def conv_bn(kw, kg, kb, km, kv, c_out, c_in):
        w = 0.3 * jax.random.normal(kw, (c_out, c_in), jnp.float32)
        gamma = 1.0 + 0.1 * jax.random.normal(kg, (c_out,), jnp.float32)
        beta = 0.1 * jax.random.normal(kb, (c_out,), jnp.float32)
        mean = 0.1 * jax.random.normal(km, (c_out,), jnp.float32)
        var = 1.0 + 0.1 * jnp.abs(jax.random.normal(kv, (c_out,), jnp.float32))
        scale = gamma / jnp.sqrt(var + eps)
        w_f = w * scale[:, None]
        b_f = (beta - mean * scale)[:, None]          # (c_out, 1)
        return w_f, b_f

    w0, b0 = conv_bn(ks[0], ks[1], ks[2], ks[3], ks[4], 16, G)   # conv0
    w1, b1 = conv_bn(ks[5], ks[6], ks[7], ks[8], ks[9], 8, 16)   # conv1
    w2 = 0.3 * jax.random.normal(ks[10], (1, 8), jnp.float32)    # similarity
    b2 = 0.1 * jax.random.normal(ks[11], (1, 1), jnp.float32)
    return (w0, b0, w1, b1, w2, b2)


# ----------------------------------------------------------------------------
# pure-JAX f32 reference (mirrors the PyTorch forward exactly, BN folded).
# ----------------------------------------------------------------------------
def reference_forward(ref_feature, grid, params, *, neighbors=9, G=8):
    B, C, H, W = ref_feature.shape
    Cg = C // G
    N = neighbors
    w0, b0, w1, b1, w2, b2 = params
    xs = jnp.moveaxis(grid_sample_border_nhwc(ref_feature, grid), -1, 1)
    rf = ref_feature.reshape(B, G, Cg, H, W)
    x = xs.reshape(B, G, Cg, N, H, W)
    x = (x * rf[:, :, :, None]).mean(2)                          # (B, G, N, H, W)
    hp = jax.lax.Precision.HIGHEST
    h = jnp.einsum('oc,bcnhw->bonhw', w0, x, precision=hp) \
        + b0[:, 0][None, :, None, None, None]
    h = jnp.maximum(h, 0.0)
    h = jnp.einsum('oc,bcnhw->bonhw', w1, h, precision=hp) \
        + b1[:, 0][None, :, None, None, None]
    h = jnp.maximum(h, 0.0)
    h = jnp.einsum('oc,bcnhw->bonhw', w2, h, precision=hp) \
        + b2[:, 0][None, :, None, None, None]
    return jax.nn.sigmoid(h[:, 0])                               # (B, N, H, W)


if __name__ == "__main__":
    B, C, H, W = 2, 16, 16, 16       # feature_channel=16, G=8 -> Cg=2
    G, N = 8, 9

    key = jax.random.PRNGKey(0)
    k_feat, k_grid, k_par = jax.random.split(key, 3)

    ref_feature = jax.random.normal(k_feat, (B, C, H, W), jnp.float32)
    # sampling grid, slightly beyond [-1, 1] to exercise 'border' padding
    grid = jax.random.uniform(k_grid, (B, N * H, W, 2), jnp.float32,
                              minval=-1.1, maxval=1.1)
    params = make_params(k_par, G=G)

    fwd = jax.jit(functools.partial(feature_weight_net, neighbors=N, G=G))
    out = fwd(ref_feature, grid, params)
    out = jax.block_until_ready(out)

    ref_out = reference_forward(ref_feature, grid, params, neighbors=N, G=G)
    # kernel runs bf16 end-to-end (f32 matmul accumulation) and emits a bf16
    # sigmoid output; compare against the f32 HIGHEST-precision reference with
    # a bf16-level tolerance.
    np.testing.assert_allclose(np.asarray(out.astype(jnp.float32)),
                               np.asarray(ref_out), atol=3e-2, rtol=0)
    assert out.shape == (B, N, H, W)
    print("KERNEL_OK")
</pallas_src>

<mosaic_0001>
module attributes {stable_mosaic.version = 11 : i64} {
  func.func @_fwnet_kernel(%arg0: i32, %arg1: i32, %arg2: memref<1x16x256xbf16, #tpu.memory_space<vmem>>, %arg3: memref<1x9x16x256xbf16, #tpu.memory_space<vmem>>, %arg4: memref<16x16xbf16, #tpu.memory_space<vmem>>, %arg5: memref<16x1xf32, #tpu.memory_space<vmem>>, %arg6: memref<8x16xbf16, #tpu.memory_space<vmem>>, %arg7: memref<8x1xf32, #tpu.memory_space<vmem>>, %arg8: memref<1x8xbf16, #tpu.memory_space<vmem>>, %arg9: memref<1x1xf32, #tpu.memory_space<vmem>>, %arg10: memref<1x9x256xbf16, #tpu.memory_space<vmem>>) attributes {dimension_semantics = [#tpu.dimension_semantics<parallel>, #tpu.dimension_semantics<parallel>], iteration_bounds = array<i64: 2, 1>, scalar_prefetch = 0 : i64, scratch_operands = 0 : i64, tpu.core_type = #tpu.core_type<tc>, window_params = [{transform_indices = @transform_0, window_bounds = array<i64: 1, 16, 256>}, {transform_indices = @transform_1, window_bounds = array<i64: 1, 9, 16, 256>}, {pipeline_mode = #tpu.pipeline_mode<synchronous>, transform_indices = @transform_2, window_bounds = array<i64: 16, 16>}, {pipeline_mode = #tpu.pipeline_mode<synchronous>, transform_indices = @transform_3, window_bounds = array<i64: 16, 1>}, {pipeline_mode = #tpu.pipeline_mode<synchronous>, transform_indices = @transform_4, window_bounds = array<i64: 8, 16>}, {pipeline_mode = #tpu.pipeline_mode<synchronous>, transform_indices = @transform_5, window_bounds = array<i64: 8, 1>}, {pipeline_mode = #tpu.pipeline_mode<synchronous>, transform_indices = @transform_6, window_bounds = array<i64: 1, 8>}, {pipeline_mode = #tpu.pipeline_mode<synchronous>, transform_indices = @transform_7, window_bounds = array<i64: 1, 1>}, {transform_indices = @transform_8, window_bounds = array<i64: 1, 9, 256>}]} {
    %c0 = arith.constant 0 : index
    %c0_0 = arith.constant 0 : index
    %c0_1 = arith.constant 0 : index
    %0 = vector.load %arg2[%c0, %c0_0, %c0_1] : memref<1x16x256xbf16, #tpu.memory_space<vmem>>, vector<1x16x256xbf16>
    %1 = vector.shape_cast %0 : vector<1x16x256xbf16> to vector<16x256xbf16>
    %c0_2 = arith.constant 0 : index
    %c0_3 = arith.constant 0 : index
    %c0_4 = arith.constant 0 : index
    %c0_5 = arith.constant 0 : index
    %2 = vector.load %arg3[%c0_2, %c0_3, %c0_4, %c0_5] : memref<1x9x16x256xbf16, #tpu.memory_space<vmem>>, vector<1x1x16x256xbf16>
    %3 = vector.shape_cast %2 : vector<1x1x16x256xbf16> to vector<16x256xbf16>
    %4 = arith.mulf %3, %1 : vector<16x256xbf16>
    %c0_6 = arith.constant 0 : index
    %c0_7 = arith.constant 0 : index
    %5 = vector.load %arg4[%c0_6, %c0_7] : memref<16x16xbf16, #tpu.memory_space<vmem>>, vector<16x16xbf16>
    %cst = arith.constant dense<0.000000e+00> : vector<16x256xf32>
    %6 = tpu.matmul %5, %4, %cst {dimension_numbers = #tpu.dot_dimension_numbers<[1], [0], [0], [1], [0, 0, 1, 1], [], []>} : vector<16x16xbf16>, vector<16x256xbf16>, vector<16x256xf32> -> vector<16x256xf32>
    %c0_8 = arith.constant 0 : index
    %c0_9 = arith.constant 0 : index
    %7 = vector.load %arg5[%c0_8, %c0_9] : memref<16x1xf32, #tpu.memory_space<vmem>>, vector<16x1xf32>
    %8 = vector.broadcast %7 : vector<16x1xf32> to vector<16x256xf32>
    %9 = arith.addf %6, %8 : vector<16x256xf32>
    %cst_10 = arith.constant 0.000000e+00 : f32
    %10 = vector.broadcast %cst_10 : f32 to vector<16x256xf32>
    %11 = arith.maximumf %9, %10 : vector<16x256xf32>
    %12 = arith.truncf %11 : vector<16x256xf32> to vector<16x256xbf16>
    %c0_11 = arith.constant 0 : index
    %c0_12 = arith.constant 0 : index
    %13 = vector.load %arg6[%c0_11, %c0_12] : memref<8x16xbf16, #tpu.memory_space<vmem>>, vector<8x16xbf16>
    %cst_13 = arith.constant dense<0.000000e+00> : vector<8x256xf32>
    %14 = tpu.matmul %13, %12, %cst_13 {dimension_numbers = #tpu.dot_dimension_numbers<[1], [0], [0], [1], [0, 0, 1, 1], [], []>} : vector<8x16xbf16>, vector<16x256xbf16>, vector<8x256xf32> -> vector<8x256xf32>
    %c0_14 = arith.constant 0 : index
    %c0_15 = arith.constant 0 : index
    %15 = vector.load %arg7[%c0_14, %c0_15] : memref<8x1xf32, #tpu.memory_space<vmem>>, vector<8x1xf32>
    %16 = vector.broadcast %15 : vector<8x1xf32> to vector<8x256xf32>
    %17 = arith.addf %14, %16 : vector<8x256xf32>
    %cst_16 = arith.constant 0.000000e+00 : f32
    %18 = vector.broadcast %cst_16 : f32 to vector<8x256xf32>
    %19 = arith.maximumf %17, %18 : vector<8x256xf32>
    %20 = arith.truncf %19 : vector<8x256xf32> to vector<8x256xbf16>
    %c0_17 = arith.constant 0 : index
    %c0_18 = arith.constant 0 : index
    %21 = vector.load %arg8[%c0_17, %c0_18] : memref<1x8xbf16, #tpu.memory_space<vmem>>, vector<1x8xbf16>
    %cst_19 = arith.constant dense<0.000000e+00> : vector<1x256xf32>
    %22 = tpu.matmul %21, %20, %cst_19 {dimension_numbers = #tpu.dot_dimension_numbers<[1], [0], [0], [1], [0, 0, 1, 1], [], []>} : vector<1x8xbf16>, vector<8x256xbf16>, vector<1x256xf32> -> vector<1x256xf32>
    %c0_20 = arith.constant 0 : index
    %c0_21 = arith.constant 0 : index
    %23 = vector.load %arg9[%c0_20, %c0_21] : memref<1x1xf32, #tpu.memory_space<vmem>>, vector<1x1xf32>
    %24 = vector.broadcast %23 : vector<1x1xf32> to vector<1x256xf32>
    %25 = arith.addf %22, %24 : vector<1x256xf32>
    %c0_22 = arith.constant 0 : index
    %c1 = arith.constant 1 : index
    %c0_23 = arith.constant 0 : index
    %c0_24 = arith.constant 0 : index
    %26 = vector.load %arg3[%c0_22, %c1, %c0_23, %c0_24] : memref<1x9x16x256xbf16, #tpu.memory_space<vmem>>, vector<1x1x16x256xbf16>
    %27 = vector.shape_cast %26 : vector<1x1x16x256xbf16> to vector<16x256xbf16>
    %28 = arith.mulf %27, %1 : vector<16x256xbf16>
    %c0_25 = arith.constant 0 : index
    %c0_26 = arith.constant 0 : index
    %29 = vector.load %arg4[%c0_25, %c0_26] : memref<16x16xbf16, #tpu.memory_space<vmem>>, vector<16x16xbf16>
    %cst_27 = arith.constant dense<0.000000e+00> : vector<16x256xf32>
    %30 = tpu.matmul %29, %28, %cst_27 {dimension_numbers = #tpu.dot_dimension_numbers<[1], [0], [0], [1], [0, 0, 1, 1], [], []>} : vector<16x16xbf16>, vector<16x256xbf16>, vector<16x256xf32> -> vector<16x256xf32>
    %c0_28 = arith.constant 0 : index
    %c0_29 = arith.constant 0 : index
    %31 = vector.load %arg5[%c0_28, %c0_29] : memref<16x1xf32, #tpu.memory_space<vmem>>, vector<16x1xf32>
    %32 = vector.broadcast %31 : vector<16x1xf32> to vector<16x256xf32>
    %33 = arith.addf %30, %32 : vector<16x256xf32>
    %cst_30 = arith.constant 0.000000e+00 : f32
    %34 = vector.broadcast %cst_30 : f32 to vector<16x256xf32>
    %35 = arith.maximumf %33, %34 : vector<16x256xf32>
    %36 = arith.truncf %35 : vector<16x256xf32> to vector<16x256xbf16>
    %c0_31 = arith.constant 0 : index
    %c0_32 = arith.constant 0 : index
    %37 = vector.load %arg6[%c0_31, %c0_32] : memref<8x16xbf16, #tpu.memory_space<vmem>>, vector<8x16xbf16>
    %cst_33 = arith.constant dense<0.000000e+00> : vector<8x256xf32>
    %38 = tpu.matmul %37, %36, %cst_33 {dimension_numbers = #tpu.dot_dimension_numbers<[1], [0], [0], [1], [0, 0, 1, 1], [], []>} : vector<8x16xbf16>, vector<16x256xbf16>, vector<8x256xf32> -> vector<8x256xf32>
    %c0_34 = arith.constant 0 : index
    %c0_35 = arith.constant 0 : index
    %39 = vector.load %arg7[%c0_34, %c0_35] : memref<8x1xf32, #tpu.memory_space<vmem>>, vector<8x1xf32>
    %40 = vector.broadcast %39 : vector<8x1xf32> to vector<8x256xf32>
    %41 = arith.addf %38, %40 : vector<8x256xf32>
    %cst_36 = arith.constant 0.000000e+00 : f32
    %42 = vector.broadcast %cst_36 : f32 to vector<8x256xf32>
    %43 = arith.maximumf %41, %42 : vector<8x256xf32>
    %44 = arith.truncf %43 : vector<8x256xf32> to vector<8x256xbf16>
    %c0_37 = arith.constant 0 : index
    %c0_38 = arith.constant 0 : index
    %45 = vector.load %arg8[%c0_37, %c0_38] : memref<1x8xbf16, #tpu.memory_space<vmem>>, vector<1x8xbf16>
    %cst_39 = arith.constant dense<0.000000e+00> : vector<1x256xf32>
    %46 = tpu.matmul %45, %44, %cst_39 {dimension_numbers = #tpu.dot_dimension_numbers<[1], [0], [0], [1], [0, 0, 1, 1], [], []>} : vector<1x8xbf16>, vector<8x256xbf16>, vector<1x256xf32> -> vector<1x256xf32>
    %c0_40 = arith.constant 0 : index
    %c0_41 = arith.constant 0 : index
    %47 = vector.load %arg9[%c0_40, %c0_41] : memref<1x1xf32, #tpu.memory_space<vmem>>, vector<1x1xf32>
    %48 = vector.broadcast %47 : vector<1x1xf32> to vector<1x256xf32>
    %49 = arith.addf %46, %48 : vector<1x256xf32>
    %c0_42 = arith.constant 0 : index
    %c2 = arith.constant 2 : index
    %c0_43 = arith.constant 0 : index
    %c0_44 = arith.constant 0 : index
    %50 = vector.load %arg3[%c0_42, %c2, %c0_43, %c0_44] : memref<1x9x16x256xbf16, #tpu.memory_space<vmem>>, vector<1x1x16x256xbf16>
    %51 = vector.shape_cast %50 : vector<1x1x16x256xbf16> to vector<16x256xbf16>
    %52 = arith.mulf %51, %1 : vector<16x256xbf16>
    %c0_45 = arith.constant 0 : index
    %c0_46 = arith.constant 0 : index
    %53 = vector.load %arg4[%c0_45, %c0_46] : memref<16x16xbf16, #tpu.memory_space<vmem>>, vector<16x16xbf16>
    %cst_47 = arith.constant dense<0.000000e+00> : vector<16x256xf32>
    %54 = tpu.matmul %53, %52, %cst_47 {dimension_numbers = #tpu.dot_dimension_numbers<[1], [0], [0], [1], [0, 0, 1, 1], [], []>} : vector<16x16xbf16>, vector<16x256xbf16>, vector<16x256xf32> -> vector<16x256xf32>
    %c0_48 = arith.constant 0 : index
    %c0_49 = arith.constant 0 : index
    %55 = vector.load %arg5[%c0_48, %c0_49] : memref<16x1xf32, #tpu.memory_space<vmem>>, vector<16x1xf32>
    %56 = vector.broadcast %55 : vector<16x1xf32> to vector<16x256xf32>
    %57 = arith.addf %54, %56 : vector<16x256xf32>
    %cst_50 = arith.constant 0.000000e+00 : f32
    %58 = vector.broadcast %cst_50 : f32 to vector<16x256xf32>
    %59 = arith.maximumf %57, %58 : vector<16x256xf32>
    %60 = arith.truncf %59 : vector<16x256xf32> to vector<16x256xbf16>
    %c0_51 = arith.constant 0 : index
    %c0_52 = arith.constant 0 : index
    %61 = vector.load %arg6[%c0_51, %c0_52] : memref<8x16xbf16, #tpu.memory_space<vmem>>, vector<8x16xbf16>
    %cst_53 = arith.constant dense<0.000000e+00> : vector<8x256xf32>
    %62 = tpu.matmul %61, %60, %cst_53 {dimension_numbers = #tpu.dot_dimension_numbers<[1], [0], [0], [1], [0, 0, 1, 1], [], []>} : vector<8x16xbf16>, vector<16x256xbf16>, vector<8x256xf32> -> vector<8x256xf32>
    %c0_54 = arith.constant 0 : index
    %c0_55 = arith.constant 0 : index
    %63 = vector.load %arg7[%c0_54, %c0_55] : memref<8x1xf32, #tpu.memory_space<vmem>>, vector<8x1xf32>
    %64 = vector.broadcast %63 : vector<8x1xf32> to vector<8x256xf32>
    %65 = arith.addf %62, %64 : vector<8x256xf32>
    %cst_56 = arith.constant 0.000000e+00 : f32
    %66 = vector.broadcast %cst_56 : f32 to vector<8x256xf32>
    %67 = arith.maximumf %65, %66 : vector<8x256xf32>
    %68 = arith.truncf %67 : vector<8x256xf32> to vector<8x256xbf16>
    %c0_57 = arith.constant 0 : index
    %c0_58 = arith.constant 0 : index
    %69 = vector.load %arg8[%c0_57, %c0_58] : memref<1x8xbf16, #tpu.memory_space<vmem>>, vector<1x8xbf16>
    %cst_59 = arith.constant dense<0.000000e+00> : vector<1x256xf32>
    %70 = tpu.matmul %69, %68, %cst_59 {dimension_numbers = #tpu.dot_dimension_numbers<[1], [0], [0], [1], [0, 0, 1, 1], [], []>} : vector<1x8xbf16>, vector<8x256xbf16>, vector<1x256xf32> -> vector<1x256xf32>
    %c0_60 = arith.constant 0 : index
    %c0_61 = arith.constant 0 : index
    %71 = vector.load %arg9[%c0_60, %c0_61] : memref<1x1xf32, #tpu.memory_space<vmem>>, vector<1x1xf32>
    %72 = vector.broadcast %71 : vector<1x1xf32> to vector<1x256xf32>
    %73 = arith.addf %70, %72 : vector<1x256xf32>
    %c0_62 = arith.constant 0 : index
    %c3 = arith.constant 3 : index
    %c0_63 = arith.constant 0 : index
    %c0_64 = arith.constant 0 : index
    %74 = vector.load %arg3[%c0_62, %c3, %c0_63, %c0_64] : memref<1x9x16x256xbf16, #tpu.memory_space<vmem>>, vector<1x1x16x256xbf16>
    %75 = vector.shape_cast %74 : vector<1x1x16x256xbf16> to vector<16x256xbf16>
    %76 = arith.mulf %75, %1 : vector<16x256xbf16>
    %c0_65 = arith.constant 0 : index
    %c0_66 = arith.constant 0 : index
    %77 = vector.load %arg4[%c0_65, %c0_66] : memref<16x16xbf16, #tpu.memory_space<vmem>>, vector<16x16xbf16>
    %cst_67 = arith.constant dense<0.000000e+00> : vector<16x256xf32>
    %78 = tpu.matmul %77, %76, %cst_67 {dimension_numbers = #tpu.dot_dimension_numbers<[1], [0], [0], [1], [0, 0, 1, 1], [], []>} : vector<16x16xbf16>, vector<16x256xbf16>, vector<16x256xf32> -> vector<16x256xf32>
    %c0_68 = arith.constant 0 : index
    %c0_69 = arith.constant 0 : index
    %79 = vector.load %arg5[%c0_68, %c0_69] : memref<16x1xf32, #tpu.memory_space<vmem>>, vector<16x1xf32>
    %80 = vector.broadcast %79 : vector<16x1xf32> to vector<16x256xf32>
    %81 = arith.addf %78, %80 : vector<16x256xf32>
    %cst_70 = arith.constant 0.000000e+00 : f32
    %82 = vector.broadcast %cst_70 : f32 to vector<16x256xf32>
    %83 = arith.maximumf %81, %82 : vector<16x256xf32>
    %84 = arith.truncf %83 : vector<16x256xf32> to vector<16x256xbf16>
    %c0_71 = arith.constant 0 : index
    %c0_72 = arith.constant 0 : index
    %85 = vector.load %arg6[%c0_71, %c0_72] : memref<8x16xbf16, #tpu.memory_space<vmem>>, vector<8x16xbf16>
    %cst_73 = arith.constant dense<0.000000e+00> : vector<8x256xf32>
    %86 = tpu.matmul %85, %84, %cst_73 {dimension_numbers = #tpu.dot_dimension_numbers<[1], [0], [0], [1], [0, 0, 1, 1], [], []>} : vector<8x16xbf16>, vector<16x256xbf16>, vector<8x256xf32> -> vector<8x256xf32>
    %c0_74 = arith.constant 0 : index
    %c0_75 = arith.constant 0 : index
    %87 = vector.load %arg7[%c0_74, %c0_75] : memref<8x1xf32, #tpu.memory_space<vmem>>, vector<8x1xf32>
    %88 = vector.broadcast %87 : vector<8x1xf32> to vector<8x256xf32>
    %89 = arith.addf %86, %88 : vector<8x256xf32>
    %cst_76 = arith.constant 0.000000e+00 : f32
    %90 = vector.broadcast %cst_76 : f32 to vector<8x256xf32>
    %91 = arith.maximumf %89, %90 : vector<8x256xf32>
    %92 = arith.truncf %91 : vector<8x256xf32> to vector<8x256xbf16>
    %c0_77 = arith.constant 0 : index
    %c0_78 = arith.constant 0 : index
    %93 = vector.load %arg8[%c0_77, %c0_78] : memref<1x8xbf16, #tpu.memory_space<vmem>>, vector<1x8xbf16>
    %cst_79 = arith.constant dense<0.000000e+00> : vector<1x256xf32>
    %94 = tpu.matmul %93, %92, %cst_79 {dimension_numbers = #tpu.dot_dimension_numbers<[1], [0], [0], [1], [0, 0, 1, 1], [], []>} : vector<1x8xbf16>, vector<8x256xbf16>, vector<1x256xf32> -> vector<1x256xf32>
    %c0_80 = arith.constant 0 : index
    %c0_81 = arith.constant 0 : index
    %95 = vector.load %arg9[%c0_80, %c0_81] : memref<1x1xf32, #tpu.memory_space<vmem>>, vector<1x1xf32>
    %96 = vector.broadcast %95 : vector<1x1xf32> to vector<1x256xf32>
    %97 = arith.addf %94, %96 : vector<1x256xf32>
    %c0_82 = arith.constant 0 : index
    %c4 = arith.constant 4 : index
    %c0_83 = arith.constant 0 : index
    %c0_84 = arith.constant 0 : index
    %98 = vector.load %arg3[%c0_82, %c4, %c0_83, %c0_84] : memref<1x9x16x256xbf16, #tpu.memory_space<vmem>>, vector<1x1x16x256xbf16>
    %99 = vector.shape_cast %98 : vector<1x1x16x256xbf16> to vector<16x256xbf16>
    %100 = arith.mulf %99, %1 : vector<16x256xbf16>
    %c0_85 = arith.constant 0 : index
    %c0_86 = arith.constant 0 : index
    %101 = vector.load %arg4[%c0_85, %c0_86] : memref<16x16xbf16, #tpu.memory_space<vmem>>, vector<16x16xbf16>
    %cst_87 = arith.constant dense<0.000000e+00> : vector<16x256xf32>
    %102 = tpu.matmul %101, %100, %cst_87 {dimension_numbers = #tpu.dot_dimension_numbers<[1], [0], [0], [1], [0, 0, 1, 1], [], []>} : vector<16x16xbf16>, vector<16x256xbf16>, vector<16x256xf32> -> vector<16x256xf32>
    %c0_88 = arith.constant 0 : index
    %c0_89 = arith.constant 0 : index
    %103 = vector.load %arg5[%c0_88, %c0_89] : memref<16x1xf32, #tpu.memory_space<vmem>>, vector<16x1xf32>
    %104 = vector.broadcast %103 : vector<16x1xf32> to vector<16x256xf32>
    %105 = arith.addf %102, %104 : vector<16x256xf32>
    %cst_90 = arith.constant 0.000000e+00 : f32
    %106 = vector.broadcast %cst_90 : f32 to vector<16x256xf32>
    %107 = arith.maximumf %105, %106 : vector<16x256xf32>
    %108 = arith.truncf %107 : vector<16x256xf32> to vector<16x256xbf16>
    %c0_91 = arith.constant 0 : index
    %c0_92 = arith.constant 0 : index
    %109 = vector.load %arg6[%c0_91, %c0_92] : memref<8x16xbf16, #tpu.memory_space<vmem>>, vector<8x16xbf16>
    %cst_93 = arith.constant dense<0.000000e+00> : vector<8x256xf32>
    %110 = tpu.matmul %109, %108, %cst_93 {dimension_numbers = #tpu.dot_dimension_numbers<[1], [0], [0], [1], [0, 0, 1, 1], [], []>} : vector<8x16xbf16>, vector<16x256xbf16>, vector<8x256xf32> -> vector<8x256xf32>
    %c0_94 = arith.constant 0 : index
    %c0_95 = arith.constant 0 : index
    %111 = vector.load %arg7[%c0_94, %c0_95] : memref<8x1xf32, #tpu.memory_space<vmem>>, vector<8x1xf32>
    %112 = vector.broadcast %111 : vector<8x1xf32> to vector<8x256xf32>
    %113 = arith.addf %110, %112 : vector<8x256xf32>
    %cst_96 = arith.constant 0.000000e+00 : f32
    %114 = vector.broadcast %cst_96 : f32 to vector<8x256xf32>
    %115 = arith.maximumf %113, %114 : vector<8x256xf32>
    %116 = arith.truncf %115 : vector<8x256xf32> to vector<8x256xbf16>
    %c0_97 = arith.constant 0 : index
    %c0_98 = arith.constant 0 : index
    %117 = vector.load %arg8[%c0_97, %c0_98] : memref<1x8xbf16, #tpu.memory_space<vmem>>, vector<1x8xbf16>
    %cst_99 = arith.constant dense<0.000000e+00> : vector<1x256xf32>
    %118 = tpu.matmul %117, %116, %cst_99 {dimension_numbers = #tpu.dot_dimension_numbers<[1], [0], [0], [1], [0, 0, 1, 1], [], []>} : vector<1x8xbf16>, vector<8x256xbf16>, vector<1x256xf32> -> vector<1x256xf32>
    %c0_100 = arith.constant 0 : index
    %c0_101 = arith.constant 0 : index
    %119 = vector.load %arg9[%c0_100, %c0_101] : memref<1x1xf32, #tpu.memory_space<vmem>>, vector<1x1xf32>
    %120 = vector.broadcast %119 : vector<1x1xf32> to vector<1x256xf32>
    %121 = arith.addf %118, %120 : vector<1x256xf32>
    %c0_102 = arith.constant 0 : index
    %c5 = arith.constant 5 : index
    %c0_103 = arith.constant 0 : index
    %c0_104 = arith.constant 0 : index
    %122 = vector.load %arg3[%c0_102, %c5, %c0_103, %c0_104] : memref<1x9x16x256xbf16, #tpu.memory_space<vmem>>, vector<1x1x16x256xbf16>
    %123 = vector.shape_cast %122 : vector<1x1x16x256xbf16> to vector<16x256xbf16>
    %124 = arith.mulf %123, %1 : vector<16x256xbf16>
    %c0_105 = arith.constant 0 : index
    %c0_106 = arith.constant 0 : index
    %125 = vector.load %arg4[%c0_105, %c0_106] : memref<16x16xbf16, #tpu.memory_space<vmem>>, vector<16x16xbf16>
    %cst_107 = arith.constant dense<0.000000e+00> : vector<16x256xf32>
    %126 = tpu.matmul %125, %124, %cst_107 {dimension_numbers = #tpu.dot_dimension_numbers<[1], [0], [0], [1], [0, 0, 1, 1], [], []>} : vector<16x16xbf16>, vector<16x256xbf16>, vector<16x256xf32> -> vector<16x256xf32>
    %c0_108 = arith.constant 0 : index
    %c0_109 = arith.constant 0 : index
    %127 = vector.load %arg5[%c0_108, %c0_109] : memref<16x1xf32, #tpu.memory_space<vmem>>, vector<16x1xf32>
    %128 = vector.broadcast %127 : vector<16x1xf32> to vector<16x256xf32>
    %129 = arith.addf %126, %128 : vector<16x256xf32>
    %cst_110 = arith.constant 0.000000e+00 : f32
    %130 = vector.broadcast %cst_110 : f32 to vector<16x256xf32>
    %131 = arith.maximumf %129, %130 : vector<16x256xf32>
    %132 = arith.truncf %131 : vector<16x256xf32> to vector<16x256xbf16>
    %c0_111 = arith.constant 0 : index
    %c0_112 = arith.constant 0 : index
    %133 = vector.load %arg6[%c0_111, %c0_112] : memref<8x16xbf16, #tpu.memory_space<vmem>>, vector<8x16xbf16>
    %cst_113 = arith.constant dense<0.000000e+00> : vector<8x256xf32>
    %134 = tpu.matmul %133, %132, %cst_113 {dimension_numbers = #tpu.dot_dimension_numbers<[1], [0], [0], [1], [0, 0, 1, 1], [], []>} : vector<8x16xbf16>, vector<16x256xbf16>, vector<8x256xf32> -> vector<8x256xf32>
    %c0_114 = arith.constant 0 : index
    %c0_115 = arith.constant 0 : index
    %135 = vector.load %arg7[%c0_114, %c0_115] : memref<8x1xf32, #tpu.memory_space<vmem>>, vector<8x1xf32>
    %136 = vector.broadcast %135 : vector<8x1xf32> to vector<8x256xf32>
    %137 = arith.addf %134, %136 : vector<8x256xf32>
    %cst_116 = arith.constant 0.000000e+00 : f32
    %138 = vector.broadcast %cst_116 : f32 to vector<8x256xf32>
    %139 = arith.maximumf %137, %138 : vector<8x256xf32>
    %140 = arith.truncf %139 : vector<8x256xf32> to vector<8x256xbf16>
    %c0_117 = arith.constant 0 : index
    %c0_118 = arith.constant 0 : index
    %141 = vector.load %arg8[%c0_117, %c0_118] : memref<1x8xbf16, #tpu.memory_space<vmem>>, vector<1x8xbf16>
    %cst_119 = arith.constant dense<0.000000e+00> : vector<1x256xf32>
    %142 = tpu.matmul %141, %140, %cst_119 {dimension_numbers = #tpu.dot_dimension_numbers<[1], [0], [0], [1], [0, 0, 1, 1], [], []>} : vector<1x8xbf16>, vector<8x256xbf16>, vector<1x256xf32> -> vector<1x256xf32>
    %c0_120 = arith.constant 0 : index
    %c0_121 = arith.constant 0 : index
    %143 = vector.load %arg9[%c0_120, %c0_121] : memref<1x1xf32, #tpu.memory_space<vmem>>, vector<1x1xf32>
    %144 = vector.broadcast %143 : vector<1x1xf32> to vector<1x256xf32>
    %145 = arith.addf %142, %144 : vector<1x256xf32>
    %c0_122 = arith.constant 0 : index
    %c6 = arith.constant 6 : index
    %c0_123 = arith.constant 0 : index
    %c0_124 = arith.constant 0 : index
    %146 = vector.load %arg3[%c0_122, %c6, %c0_123, %c0_124] : memref<1x9x16x256xbf16, #tpu.memory_space<vmem>>, vector<1x1x16x256xbf16>
    %147 = vector.shape_cast %146 : vector<1x1x16x256xbf16> to vector<16x256xbf16>
    %148 = arith.mulf %147, %1 : vector<16x256xbf16>
    %c0_125 = arith.constant 0 : index
    %c0_126 = arith.constant 0 : index
    %149 = vector.load %arg4[%c0_125, %c0_126] : memref<16x16xbf16, #tpu.memory_space<vmem>>, vector<16x16xbf16>
    %cst_127 = arith.constant dense<0.000000e+00> : vector<16x256xf32>
    %150 = tpu.matmul %149, %148, %cst_127 {dimension_numbers = #tpu.dot_dimension_numbers<[1], [0], [0], [1], [0, 0, 1, 1], [], []>} : vector<16x16xbf16>, vector<16x256xbf16>, vector<16x256xf32> -> vector<16x256xf32>
    %c0_128 = arith.constant 0 : index
    %c0_129 = arith.constant 0 : index
    %151 = vector.load %arg5[%c0_128, %c0_129] : memref<16x1xf32, #tpu.memory_space<vmem>>, vector<16x1xf32>
    %152 = vector.broadcast %151 : vector<16x1xf32> to vector<16x256xf32>
    %153 = arith.addf %150, %152 : vector<16x256xf32>
    %cst_130 = arith.constant 0.000000e+00 : f32
    %154 = vector.broadcast %cst_130 : f32 to vector<16x256xf32>
    %155 = arith.maximumf %153, %154 : vector<16x256xf32>
    %156 = arith.truncf %155 : vector<16x256xf32> to vector<16x256xbf16>
    %c0_131 = arith.constant 0 : index
    %c0_132 = arith.constant 0 : index
    %157 = vector.load %arg6[%c0_131, %c0_132] : memref<8x16xbf16, #tpu.memory_space<vmem>>, vector<8x16xbf16>
    %cst_133 = arith.constant dense<0.000000e+00> : vector<8x256xf32>
    %158 = tpu.matmul %157, %156, %cst_133 {dimension_numbers = #tpu.dot_dimension_numbers<[1], [0], [0], [1], [0, 0, 1, 1], [], []>} : vector<8x16xbf16>, vector<16x256xbf16>, vector<8x256xf32> -> vector<8x256xf32>
    %c0_134 = arith.constant 0 : index
    %c0_135 = arith.constant 0 : index
    %159 = vector.load %arg7[%c0_134, %c0_135] : memref<8x1xf32, #tpu.memory_space<vmem>>, vector<8x1xf32>
    %160 = vector.broadcast %159 : vector<8x1xf32> to vector<8x256xf32>
    %161 = arith.addf %158, %160 : vector<8x256xf32>
    %cst_136 = arith.constant 0.000000e+00 : f32
    %162 = vector.broadcast %cst_136 : f32 to vector<8x256xf32>
    %163 = arith.maximumf %161, %162 : vector<8x256xf32>
    %164 = arith.truncf %163 : vector<8x256xf32> to vector<8x256xbf16>
    %c0_137 = arith.constant 0 : index
    %c0_138 = arith.constant 0 : index
    %165 = vector.load %arg8[%c0_137, %c0_138] : memref<1x8xbf16, #tpu.memory_space<vmem>>, vector<1x8xbf16>
    %cst_139 = arith.constant dense<0.000000e+00> : vector<1x256xf32>
    %166 = tpu.matmul %165, %164, %cst_139 {dimension_numbers = #tpu.dot_dimension_numbers<[1], [0], [0], [1], [0, 0, 1, 1], [], []>} : vector<1x8xbf16>, vector<8x256xbf16>, vector<1x256xf32> -> vector<1x256xf32>
    %c0_140 = arith.constant 0 : index
    %c0_141 = arith.constant 0 : index
    %167 = vector.load %arg9[%c0_140, %c0_141] : memref<1x1xf32, #tpu.memory_space<vmem>>, vector<1x1xf32>
    %168 = vector.broadcast %167 : vector<1x1xf32> to vector<1x256xf32>
    %169 = arith.addf %166, %168 : vector<1x256xf32>
    %c0_142 = arith.constant 0 : index
    %c7 = arith.constant 7 : index
    %c0_143 = arith.constant 0 : index
    %c0_144 = arith.constant 0 : index
    %170 = vector.load %arg3[%c0_142, %c7, %c0_143, %c0_144] : memref<1x9x16x256xbf16, #tpu.memory_space<vmem>>, vector<1x1x16x256xbf16>
    %171 = vector.shape_cast %170 : vector<1x1x16x256xbf16> to vector<16x256xbf16>
    %172 = arith.mulf %171, %1 : vector<16x256xbf16>
    %c0_145 = arith.constant 0 : index
    %c0_146 = arith.constant 0 : index
    %173 = vector.load %arg4[%c0_145, %c0_146] : memref<16x16xbf16, #tpu.memory_space<vmem>>, vector<16x16xbf16>
    %cst_147 = arith.constant dense<0.000000e+00> : vector<16x256xf32>
    %174 = tpu.matmul %173, %172, %cst_147 {dimension_numbers = #tpu.dot_dimension_numbers<[1], [0], [0], [1], [0, 0, 1, 1], [], []>} : vector<16x16xbf16>, vector<16x256xbf16>, vector<16x256xf32> -> vector<16x256xf32>
    %c0_148 = arith.constant 0 : index
    %c0_149 = arith.constant 0 : index
    %175 = vector.load %arg5[%c0_148, %c0_149] : memref<16x1xf32, #tpu.memory_space<vmem>>, vector<16x1xf32>
    %176 = vector.broadcast %175 : vector<16x1xf32> to vector<16x256xf32>
    %177 = arith.addf %174, %176 : vector<16x256xf32>
    %cst_150 = arith.constant 0.000000e+00 : f32
    %178 = vector.broadcast %cst_150 : f32 to vector<16x256xf32>
    %179 = arith.maximumf %177, %178 : vector<16x256xf32>
    %180 = arith.truncf %179 : vector<16x256xf32> to vector<16x256xbf16>
    %c0_151 = arith.constant 0 : index
    %c0_152 = arith.constant 0 : index
    %181 = vector.load %arg6[%c0_151, %c0_152] : memref<8x16xbf16, #tpu.memory_space<vmem>>, vector<8x16xbf16>
    %cst_153 = arith.constant dense<0.000000e+00> : vector<8x256xf32>
    %182 = tpu.matmul %181, %180, %cst_153 {dimension_numbers = #tpu.dot_dimension_numbers<[1], [0], [0], [1], [0, 0, 1, 1], [], []>} : vector<8x16xbf16>, vector<16x256xbf16>, vector<8x256xf32> -> vector<8x256xf32>
    %c0_154 = arith.constant 0 : index
    %c0_155 = arith.constant 0 : index
    %183 = vector.load %arg7[%c0_154, %c0_155] : memref<8x1xf32, #tpu.memory_space<vmem>>, vector<8x1xf32>
    %184 = vector.broadcast %183 : vector<8x1xf32> to vector<8x256xf32>
    %185 = arith.addf %182, %184 : vector<8x256xf32>
    %cst_156 = arith.constant 0.000000e+00 : f32
    %186 = vector.broadcast %cst_156 : f32 to vector<8x256xf32>
    %187 = arith.maximumf %185, %186 : vector<8x256xf32>
    %188 = arith.truncf %187 : vector<8x256xf32> to vector<8x256xbf16>
    %c0_157 = arith.constant 0 : index
    %c0_158 = arith.constant 0 : index
    %189 = vector.load %arg8[%c0_157, %c0_158] : memref<1x8xbf16, #tpu.memory_space<vmem>>, vector<1x8xbf16>
    %cst_159 = arith.constant dense<0.000000e+00> : vector<1x256xf32>
    %190 = tpu.matmul %189, %188, %cst_159 {dimension_numbers = #tpu.dot_dimension_numbers<[1], [0], [0], [1], [0, 0, 1, 1], [], []>} : vector<1x8xbf16>, vector<8x256xbf16>, vector<1x256xf32> -> vector<1x256xf32>
    %c0_160 = arith.constant 0 : index
    %c0_161 = arith.constant 0 : index
    %191 = vector.load %arg9[%c0_160, %c0_161] : memref<1x1xf32, #tpu.memory_space<vmem>>, vector<1x1xf32>
    %192 = vector.broadcast %191 : vector<1x1xf32> to vector<1x256xf32>
    %193 = arith.addf %190, %192 : vector<1x256xf32>
    %c0_162 = arith.constant 0 : index
    %c8 = arith.constant 8 : index
    %c0_163 = arith.constant 0 : index
    %c0_164 = arith.constant 0 : index
    %194 = vector.load %arg3[%c0_162, %c8, %c0_163, %c0_164] : memref<1x9x16x256xbf16, #tpu.memory_space<vmem>>, vector<1x1x16x256xbf16>
    %195 = vector.shape_cast %194 : vector<1x1x16x256xbf16> to vector<16x256xbf16>
    %196 = arith.mulf %195, %1 : vector<16x256xbf16>
    %c0_165 = arith.constant 0 : index
    %c0_166 = arith.constant 0 : index
    %197 = vector.load %arg4[%c0_165, %c0_166] : memref<16x16xbf16, #tpu.memory_space<vmem>>, vector<16x16xbf16>
    %cst_167 = arith.constant dense<0.000000e+00> : vector<16x256xf32>
    %198 = tpu.matmul %197, %196, %cst_167 {dimension_numbers = #tpu.dot_dimension_numbers<[1], [0], [0], [1], [0, 0, 1, 1], [], []>} : vector<16x16xbf16>, vector<16x256xbf16>, vector<16x256xf32> -> vector<16x256xf32>
    %c0_168 = arith.constant 0 : index
    %c0_169 = arith.constant 0 : index
    %199 = vector.load %arg5[%c0_168, %c0_169] : memref<16x1xf32, #tpu.memory_space<vmem>>, vector<16x1xf32>
    %200 = vector.broadcast %199 : vector<16x1xf32> to vector<16x256xf32>
    %201 = arith.addf %198, %200 : vector<16x256xf32>
    %cst_170 = arith.constant 0.000000e+00 : f32
    %202 = vector.broadcast %cst_170 : f32 to vector<16x256xf32>
    %203 = arith.maximumf %201, %202 : vector<16x256xf32>
    %204 = arith.truncf %203 : vector<16x256xf32> to vector<16x256xbf16>
    %c0_171 = arith.constant 0 : index
    %c0_172 = arith.constant 0 : index
    %205 = vector.load %arg6[%c0_171, %c0_172] : memref<8x16xbf16, #tpu.memory_space<vmem>>, vector<8x16xbf16>
    %cst_173 = arith.constant dense<0.000000e+00> : vector<8x256xf32>
    %206 = tpu.matmul %205, %204, %cst_173 {dimension_numbers = #tpu.dot_dimension_numbers<[1], [0], [0], [1], [0, 0, 1, 1], [], []>} : vector<8x16xbf16>, vector<16x256xbf16>, vector<8x256xf32> -> vector<8x256xf32>
    %c0_174 = arith.constant 0 : index
    %c0_175 = arith.constant 0 : index
    %207 = vector.load %arg7[%c0_174, %c0_175] : memref<8x1xf32, #tpu.memory_space<vmem>>, vector<8x1xf32>
    %208 = vector.broadcast %207 : vector<8x1xf32> to vector<8x256xf32>
    %209 = arith.addf %206, %208 : vector<8x256xf32>
    %cst_176 = arith.constant 0.000000e+00 : f32
    %210 = vector.broadcast %cst_176 : f32 to vector<8x256xf32>
    %211 = arith.maximumf %209, %210 : vector<8x256xf32>
    %212 = arith.truncf %211 : vector<8x256xf32> to vector<8x256xbf16>
    %c0_177 = arith.constant 0 : index
    %c0_178 = arith.constant 0 : index
    %213 = vector.load %arg8[%c0_177, %c0_178] : memref<1x8xbf16, #tpu.memory_space<vmem>>, vector<1x8xbf16>
    %cst_179 = arith.constant dense<0.000000e+00> : vector<1x256xf32>
    %214 = tpu.matmul %213, %212, %cst_179 {dimension_numbers = #tpu.dot_dimension_numbers<[1], [0], [0], [1], [0, 0, 1, 1], [], []>} : vector<1x8xbf16>, vector<8x256xbf16>, vector<1x256xf32> -> vector<1x256xf32>
    %c0_180 = arith.constant 0 : index
    %c0_181 = arith.constant 0 : index
    %215 = vector.load %arg9[%c0_180, %c0_181] : memref<1x1xf32, #tpu.memory_space<vmem>>, vector<1x1xf32>
    %216 = vector.broadcast %215 : vector<1x1xf32> to vector<1x256xf32>
    %217 = arith.addf %214, %216 : vector<1x256xf32>
    %218 = tpu.concatenate %25, %49, %73, %97, %121, %145, %169, %193, %217 in 0 : vector<1x256xf32>, vector<1x256xf32>, vector<1x256xf32>, vector<1x256xf32>, vector<1x256xf32>, vector<1x256xf32>, vector<1x256xf32>, vector<1x256xf32>, vector<1x256xf32> -> vector<9x256xf32>
    %219 = arith.negf %218 : vector<9x256xf32>
    %220 = math.exp %219 : vector<9x256xf32>
    %cst_182 = arith.constant 1.000000e+00 : f32
    %221 = vector.broadcast %cst_182 : f32 to vector<9x256xf32>
    %222 = arith.addf %221, %220 : vector<9x256xf32>
    %223 = arith.divf %221, %222 : vector<9x256xf32>
    %224 = arith.truncf %223 : vector<9x256xf32> to vector<9x256xbf16>
    %c0_183 = arith.constant 0 : index
    %c0_184 = arith.constant 0 : index
    %c0_185 = arith.constant 0 : index
    %225 = vector.load %arg10[%c0_183, %c0_184, %c0_185] : memref<1x9x256xbf16, #tpu.memory_space<vmem>>, vector<1x9x256xbf16>
    %226 = vector.shape_cast %225 : vector<1x9x256xbf16> to vector<9x256xbf16>
    %227 = vector.shape_cast %224 : vector<9x256xbf16> to vector<1x9x256xbf16>
    tpu.vector_store %arg10[%c0_183, %c0_184, %c0_185], %227 {strides = array<i32>} : memref<1x9x256xbf16, #tpu.memory_space<vmem>>, vector<1x9x256xbf16>,
    return
  }
  func.func @transform_0(%arg0: i32, %arg1: i32) -> (i32, i32, i32) {
    %c0_i32 = arith.constant 0 : i32
    %c0_i32_0 = arith.constant 0 : i32
    return %arg0, %c0_i32, %arg1 : i32, i32, i32
  }
  func.func @transform_1(%arg0: i32, %arg1: i32) -> (i32, i32, i32, i32) {
    %c0_i32 = arith.constant 0 : i32
    %c0_i32_0 = arith.constant 0 : i32
    %c0_i32_1 = arith.constant 0 : i32
    return %arg0, %c0_i32, %c0_i32_0, %arg1 : i32, i32, i32, i32
  }
  func.func @transform_2(%arg0: i32, %arg1: i32) -> (i32, i32) {
    %c0_i32 = arith.constant 0 : i32
    %c0_i32_0 = arith.constant 0 : i32
    %c0_i32_1 = arith.constant 0 : i32
    return %c0_i32, %c0_i32_0 : i32, i32
  }
  func.func @transform_3(%arg0: i32, %arg1: i32) -> (i32, i32) {
    %c0_i32 = arith.constant 0 : i32
    %c0_i32_0 = arith.constant 0 : i32
    %c0_i32_1 = arith.constant 0 : i32
    return %c0_i32, %c0_i32_0 : i32, i32
  }
  func.func @transform_4(%arg0: i32, %arg1: i32) -> (i32, i32) {
    %c0_i32 = arith.constant 0 : i32
    %c0_i32_0 = arith.constant 0 : i32
    %c0_i32_1 = arith.constant 0 : i32
    return %c0_i32, %c0_i32_0 : i32, i32
  }
  func.func @transform_5(%arg0: i32, %arg1: i32) -> (i32, i32) {
    %c0_i32 = arith.constant 0 : i32
    %c0_i32_0 = arith.constant 0 : i32
    %c0_i32_1 = arith.constant 0 : i32
    return %c0_i32, %c0_i32_0 : i32, i32
  }
  func.func @transform_6(%arg0: i32, %arg1: i32) -> (i32, i32) {
    %c0_i32 = arith.constant 0 : i32
    %c0_i32_0 = arith.constant 0 : i32
    %c0_i32_1 = arith.constant 0 : i32
    return %c0_i32, %c0_i32_0 : i32, i32
  }
  func.func @transform_7(%arg0: i32, %arg1: i32) -> (i32, i32) {
    %c0_i32 = arith.constant 0 : i32
    %c0_i32_0 = arith.constant 0 : i32
    %c0_i32_1 = arith.constant 0 : i32
    return %c0_i32, %c0_i32_0 : i32, i32
  }
  func.func @transform_8(%arg0: i32, %arg1: i32) -> (i32, i32, i32) {
    %c0_i32 = arith.constant 0 : i32
    %c0_i32_0 = arith.constant 0 : i32
    return %arg0, %c0_i32, %arg1 : i32, i32, i32
  }
}

</mosaic_0001>

<bundles_post_ra>
// kernel: feature_weight_net.1
= control target key start
LH: loop header
LB: loop body
LE: loop exit
PB: predicated region body
PF: predicated region fallthrough
CT: control target
= control target key end

     0   :  { %s2263_s29 = smov 0   ;;  %s2265_s30 = smov 0   ;;  %s2559_s0 = inlined_call_operand.vmem [shape: bf16[2,16,256], index: 0, kind: input, shape index: {}]   ;;  %s2560_s1 = inlined_call_operand.vmem [shape: bf16[2,9,16,256], index: 1, kind: input, shape index: {}]   ;;  %s2561_s2 = inlined_call_operand.vmem [shape: bf16[16,16], index: 2, kind: input, shape index: {}]   ;;  %s2562_s3 = inlined_call_operand.vmem [shape: f32[16,1], index: 3, kind: input, shape index: {}]   ;;  %s2563_s4 = inlined_call_operand.vmem [shape: bf16[8,16], index: 4, kind: input, shape index: {}]   ;;  %s2564_s5 = inlined_call_operand.vmem [shape: f32[8,1], index: 5, kind: input, shape index: {}]   ;;  %s2565_s6 = inlined_call_operand.vmem [shape: bf16[1,8], index: 6, kind: input, shape index: {}]   ;;  %s2566_s7 = inlined_call_operand.<no memory space> [shape: f32[1,1], index: 7, kind: input, shape index: {}]   ;;  %s2567_s8 = inlined_call_operand.vmem [shape: bf16[2,9,256], index: 8, kind: output, shape index: {}]  }
   0x1   :  { %v13_v0 = vstv %s2566_s7  ;;  %s2267_s9 = smov 0  }
   0x2   :  { %14 = vst [vmem:[#allocation2] sm:$0x1] %v13_v0 }
   0x3 LB: > { %s32_s7 = sadd.s32 1, %s2208_s30  ;;  %p2056_p0 = scmp.ge.s32.totalorder %s2212_s9, 1  ;;  %s2212_s9 = sphi %s2267_s9, %s20_s9   ;;  %s2208_s30 = sphi %s2265_s30, %s2569_s30   ;;  %s2204_s29 = sphi %s2263_s29, %s2568_s29  }
   0x4   : > { %p34_p1 = scmp.ge.s32.totalorder %s32_s7, 2  ;;  %p302_p2 = scmp.lt.s32.totalorder %s2212_s9, 3 }
   0x6   : > { %s2571_s7 = smov (%p34_p1, %s32_s7), 0  ;;  %p303_p3 = pnand %p2056_p0, %p302_p2 }
   0x7   : > { %p354_p4 = scmp.lt.s32.totalorder (!%p303_p3), %s2204_s29, 1  ;;  %v2214_v1 = vmov (!%p303_p3), 0   ;;  %v392_v2 = vld [vmem:[%s2562_s3] sm:$0xff] (!%p303_p3)  ;;  %v393_v3 = vld [vmem:[%s2562_s3 + $0x8] sm:$0xff] (!%p303_p3)  ;;  %vm419_vm0 = vcmask (!%p303_p3), 130048   ;;  %vm542_vm1 = vcmask (!%p303_p3), 1043456  }
   0x8   : > { %306 = sbr.rel (%p303_p3) target bundleno = 2585 (0xa19), region = 52  ;;  %455 = vmatprep.mubr.bf16.mxu0 (!%p303_p3), %v2214_v1  ;;  %2171 = vset.pattern.permute.xlu0 (!%p303_p3), %v2214_v1  ;;  %v2316_v12 = vld [vmem:[%s2561_s2] sm:$0xff] (!%p303_p3)   ;;  %vm538_vm2 = vcmask (!%p303_p3), 64512   ;;  %vm1880_vm3 = vcmask (!%p303_p3), 1040384   ;;  %vm1883_vm4 = vcmask (!%p303_p3), 1041408   ;;  %vm1886_vm5 = vcmask (!%p303_p3), 1042432  }
   0x9   : > { %396 = vperm.xlu0 (!%p303_p3), %2171, %v392_v2   ;;  %514 = vmatprep.mubr.bf16.mxu1 (!%p303_p3), %v2214_v1  ;;  %v473_v13 = vld [vmem:[%s2564_s5] sm:$0xff] (!%p303_p3)  ;;  %vm1891_vm6 = vcmask (!%p303_p3), 1044480   ;;  %vm1894_vm7 = vcmask (!%p303_p3), 1045504   ;;  %vm1897_vm8 = vcmask (!%p303_p3), 1046528   ;;  %vm1938_vm9 = vsmask.f32 (!%p303_p3), 256 }
   0xa   : > { %2172 = vset.pattern.permute.xlu1 (!%p303_p3), %v2214_v1  ;;  %v528_v14 = vld [vmem:[#allocation2] sm:$0x1] (!%p303_p3)  ;;  %vm1940_vm10 = vcmask (!%p303_p3), 1044484   ;;  %vm1941_vm11 = vsmask.f32 (!%p303_p3), 4352  ;;  %vm1939_vm12 = vmand (!%p303_p3), %vm1880_vm3, %vm1938_vm9 }
   0xb   : > { %476 = vperm.xlu1 (!%p303_p3), %2172, %v473_v13   ;;  %v2339_v36 = vld [vmem:[%s2563_s4] sm:$0xf] (!%p303_p3)  ;;  %vm1942_vm13 = vmand (!%p303_p3), %vm1940_vm10, %vm1941_vm11 }
   0xc   : > { %v2357_v53 = vld [vmem:[%s2565_s6] sm:$0x1] (!%p303_p3)  ;;  %vm1943_vm14 = vmor (!%p303_p3), %vm1942_vm13, %vm1939_vm12 }
   0xd   : > { %401 = vperm.xlu0 (!%p303_p3), %2171, %v393_v3  }
   0xf   : > { %s2573_s29 = smov (!%p354_p4, %s2204_s29), 1  ;;  %531 = vperm.xlu1 %2172, %v528_v14  }
  0x10   : > { %s2141_s14 = sshll.u32 %s2573_s29, 4  ;;  %s2145_s15 = smul.u32 144, %s2573_s29 }
  0x11   : > { %s361_s18 = scalar_lea.vmem %s2559_s0, %s2141_s14  ;;  %s381_s13 = scalar_lea.vmem %s2567_s8, %s2141_s14 }
  0x12   : > { %s2303_s21 = scalar_lea.vmem %s2560_s1, %s2145_s15  ;;  %v2305_v4 = vld [vmem:[%s361_s18] sm:$0xff]  ;;  %v2307_v5 = vld [vmem:[%s361_s18 + $0x8] sm:$0xff] }
  0x13   : > { %v386_v6 = vld [vmem:[%s2303_s21] sm:$0xff]  ;;  %v387_v7 = vld [vmem:[%s2303_s21 + $0x8] sm:$0xff]  ;;  %v2069_v19 = vld [vmem:[%s2303_s21 + $0x10] sm:$0xff] }
  0x14   : > { %v388_v8 = vmul.bf16 %v386_v6, %v2305_v4  ;;  %v389_v9 = vmul.bf16 %v387_v7, %v2307_v5  ;;  %v2070_v20 = vld [vmem:[%s2303_s21 + $0x18] sm:$0xff]  ;;  %v593_v27 = vmul.bf16 %v2069_v19, %v2305_v4  ;;  %v2077_v54 = vld [vmem:[%s2303_s21 + $0x20] sm:$0xff]  ;;  %v2078_v55 = vld [vmem:[%s2303_s21 + $0x28] sm:$0xff] }
  0x15   : > { %v594_v28 = vmul.bf16 %v2070_v20, %v2307_v5  ;;  %v749_v61 = vmul.bf16 %v2077_v54, %v2305_v4  ;;  %v750_v62 = vmul.bf16 %v2078_v55, %v2307_v5 }
  0x16   : > { %v2064_v10 = vcombine.high %v388_v8, %v389_v9  ;;  %v2063_v11 = vcombine.low %v388_v8, %v389_v9 }
  0x17   : > { %v2072_v35 = vcombine.high %v593_v27, %v594_v28  ;;  %v2071_v37 = vcombine.low %v593_v27, %v594_v28  ;;  %v2080_v8 = vcombine.high %v749_v61, %v750_v62  ;;  %v2079_v9 = vcombine.low %v749_v61, %v750_v62 }
  0x18   : > { %423 = vmatprep.subr.bf16.mxu0 %v2064_v10 }
  0x19   : > { %424 = vmatpush1.bf16.msra.mxu0 %v2063_v11 }
  0x1c   : > { %2065 = vmatmul.mubr.msk.bf16.vlgmr.msra.gmra.mrb[0].mxu0 %vm419_vm0, %v2316_v12 }
  0x1d   : > { %581 = vmatprep.mubr.bf16.mxu0 %v2214_v1 }
  0x88   : > { %v2324_v15 = vpop.permute.xlu0 %396 }
  0x8a   : > { %v2347_v38 = vpop.permute.xlu1 %476 }
  0x8c   : > { %v2329_v21 = vpop.permute.xlu0 %401 }
  0x8e   : > { %v532_v54 = vpop.permute.xlu1 %531 }
  0xef   : > { %v457_v16 = vpop.f32.mrb[0].mxu0 }
  0xf0   : > { %v458_v17 = vadd.f32 %v457_v16, %v2324_v15  ;;  %v459_v18 = vpop.f32.mrb[1].mxu0 }
  0xf1   : > { %v460_v22 = vadd.f32 %v459_v18, %v2324_v15  ;;  %v461_v23 = vpop.f32.mrb[2].mxu0 }
  0xf2   : > { %v462_v24 = vadd.f32 %v461_v23, %v2329_v21  ;;  %v463_v25 = vpop.f32.mrb[3].mxu0  ;;  %v466_v29 = vmax.f32 %v458_v17, 0.0 }
  0xf3   : > { %v464_v26 = vadd.f32 %v463_v25, %v2329_v21  ;;  %v467_v31 = vmax.f32 %v460_v22, 0.0 }
  0xf4   : > { %v468_v30 = vmax.f32 %v462_v24, 0.0 }
  0xf5   : > { %v469_v32 = vmax.f32 %v464_v26, 0.0 }
  0xf6   : > { %v470_v33 = vpack.c.bf16 %v468_v30, %v466_v29 }
  0xf7   : > { %v471_v34 = vpack.c.bf16 %v469_v32, %v467_v31  ;;  %v2085_v31 = vld [vmem:[%s2303_s21 + $0x30] sm:$0xff]  ;;  %v2086_v32 = vld [vmem:[%s2303_s21 + $0x38] sm:$0xff] }
  0xf9   : > { %482 = vmatprep.subr.bf16.mxu1 %v471_v34 }
  0xfa   : > { %483 = vmatpush1.bf16.msra.mxu1 %v470_v33 }
  0xfb   : > { %605 = vmatprep.subr.bf16.mxu1 %v2072_v35 }
  0xfd   : > { %2066 = vmatmul.mubr.msk.bf16.vlgmr.msra.gmra.mrb[0].mxu1 %vm419_vm0, %v2339_v36 }
  0xfe   : > { %606 = vmatpush1.bf16.msra.mxu1 %v2071_v37  ;;  %637 = vmatprep.mubr.bf16.mxu1 %v2214_v1 }
 0x105   : > { %2073 = vmatmul.mubr.msk.bf16.vlgmr.msra.gmra.mrb[4].mxu1 %vm419_vm0, %v2316_v12 }
 0x106   : > { %737 = vmatprep.mubr.bf16.mxu1 %v2214_v1 }
 0x1d0   : > { %v516_v39 = vpop.f32.mrb[0].mxu1 }
 0x1d1   : > { %v517_v40 = vadd.f32 %v516_v39, %v2347_v38  ;;  %v518_v41 = vpop.f32.mrb[1].mxu1 }
 0x1d2   : > { %v519_v42 = vadd.f32 %v518_v41, %v2347_v38  ;;  %v520_v43 = vpop.f32.mrb[2].mxu1  ;;  %v906_v41 = vmul.bf16 %v2086_v32, %v2307_v5 }
 0x1d3   : > { %v523_v44 = vmax.f32 %v517_v40, 0.0  ;;  %v521_v45 = vpop.f32.mrb[3].mxu1  ;;  %v905_v40 = vmul.bf16 %v2085_v31, %v2305_v4 }
 0x1d4   : > { %v524_v46 = vmax.f32 %v519_v42, 0.0 }
 0x1d5   : > { %v525_v47 = vpack.c.bf16 %v523_v44, %v523_v44 }
 0x1d6   : > { %v526_v48 = vpack.c.bf16 %v524_v46, %v524_v46 }
 0x1d7   : > { %v544_v49 = vsel %vm542_vm1, %v525_v47, 0 }
 0x1d8   : > { %2067 = vmatprep.subr.msk.bf16.mxu0 %vm542_vm1, %v526_v48  ;;  %v639_v50 = vpop.f32.mrb[4].mxu1  ;;  %v2088_v48 = vcombine.high %v905_v40, %v906_v41 }
 0x1d9   : > { %v640_v51 = vadd.f32 %v639_v50, %v2324_v15  ;;  %550 = vmatpush1.bf16.msra.mxu0 %v544_v49  ;;  %v641_v52 = vpop.f32.mrb[5].mxu1  ;;  %v2087_v49 = vcombine.low %v905_v40, %v906_v41  ;;  %v534_v50 = vlaneseq }
 0x1da   : > { %v642_v56 = vadd.f32 %v641_v52, %v2324_v15  ;;  %v643_v57 = vpop.f32.mrb[6].mxu1 }
 0x1db   : > { %v644_v58 = vadd.f32 %v643_v57, %v2329_v21  ;;  %v645_v59 = vpop.f32.mrb[7].mxu1  ;;  %v648_v63 = vmax.f32 %v640_v51, 0.0  ;;  %v535_v51 = vshrl.u32 %v534_v50, 7 }
 0x1dc   : > { %v646_v60 = vadd.f32 %v645_v59, %v2329_v21  ;;  %2068 = vmatmul.mubr.msk.bf16.vlgmr.msra.gmra.mrb[4].mxu0 %vm538_vm2, %v2357_v53  ;;  %v649_v2 = vmax.f32 %v642_v56, 0.0 }
 0x1dd   : > { %v650_v0 = vmax.f32 %v644_v58, 0.0  ;;  %686 = vmatprep.mubr.bf16.mxu0 %v2214_v1  ;;  %v536_v52 = vsub.s32 0, %v535_v51 }
 0x1de   : > { %v651_v3 = vmax.f32 %v646_v60, 0.0 }
 0x1df   : > { %v652_v6 = vpack.c.bf16 %v650_v0, %v648_v63  ;;  %v2396_v55 = vrot.slane %v532_v54, %v536_v52 }
 0x1e0   : > { %v653_v7 = vpack.c.bf16 %v651_v3, %v649_v2 }
 0x1e2   : > { %654 = vmatprep.subr.bf16.mxu0 %v653_v7 }
 0x1e3   : > { %655 = vmatpush1.bf16.msra.mxu0 %v652_v6 }
 0x1e4   : > { %761 = vmatprep.subr.bf16.mxu0 %v2080_v8 }
 0x1e6   : > { %2074 = vmatmul.mubr.msk.bf16.vlgmr.msra.gmra.mrb[8].mxu0 %vm419_vm0, %v2339_v36 }
 0x1e7   : > { %762 = vmatpush1.bf16.msra.mxu0 %v2079_v9  ;;  %793 = vmatprep.mubr.bf16.mxu0 %v2214_v1 }
 0x1ee   : > { %2081 = vmatmul.mubr.msk.bf16.vlgmr.msra.gmra.mrb[12].mxu0 %vm419_vm0, %v2316_v12 }
 0x1ef   : > { %893 = vmatprep.mubr.bf16.mxu0 %v2214_v1 }
 0x2af   : > { %v583_v10 = vpop.f32.mrb[4].mxu0 }
 0x2b0   : > { %v585_v11 = vpop.f32.mrb[5].mxu0  ;;  %v584_v61 = vadd.f32 %v583_v10, %v2396_v55 }
 0x2b1   : > { %v587_v13 = vpop.f32.mrb[6].mxu0  ;;  %v586_v0 = vadd.f32 %v585_v11, %v2396_v55 }
 0x2b2   : > { %v588_v14 = vpop.f32.mrb[7].mxu0 }
 0x2b9   : > { %v688_v16 = vpop.f32.mrb[8].mxu0 }
 0x2ba   : > { %v689_v17 = vadd.f32 %v688_v16, %v2347_v38  ;;  %v690_v18 = vpop.f32.mrb[9].mxu0 }
 0x2bb   : > { %v691_v19 = vadd.f32 %v690_v18, %v2347_v38  ;;  %v692_v20 = vpop.f32.mrb[10].mxu0 }
 0x2bc   : > { %v695_v22 = vmax.f32 %v689_v17, 0.0  ;;  %v693_v23 = vpop.f32.mrb[11].mxu0 }
 0x2bd   : > { %v696_v24 = vmax.f32 %v691_v19, 0.0 }
 0x2be   : > { %v697_v25 = vpack.c.bf16 %v695_v22, %v695_v22 }
 0x2bf   : > { %v698_v26 = vpack.c.bf16 %v696_v24, %v696_v24  ;;  %v2093_v24 = vld [vmem:[%s2303_s21 + $0x40] sm:$0xff] }
 0x2c0   : > { %v700_v27 = vsel %vm542_vm1, %v697_v25, 0  ;;  %v2094_v25 = vld [vmem:[%s2303_s21 + $0x48] sm:$0xff]  ;;  %v1061_v31 = vmul.bf16 %v2093_v24, %v2305_v4 }
 0x2c1   : > { %2075 = vmatprep.subr.msk.bf16.mxu1 %vm542_vm1, %v698_v26  ;;  %v795_v28 = vpop.f32.mrb[12].mxu0  ;;  %v1062_v32 = vmul.bf16 %v2094_v25, %v2307_v5 }
 0x2c2   : > { %v796_v29 = vadd.f32 %v795_v28, %v2324_v15  ;;  %706 = vmatpush1.bf16.msra.mxu1 %v700_v27  ;;  %v797_v30 = vpop.f32.mrb[13].mxu0 }
 0x2c3   : > { %v798_v33 = vadd.f32 %v797_v30, %v2324_v15  ;;  %v799_v34 = vpop.f32.mrb[14].mxu0  ;;  %v2096_v41 = vcombine.high %v1061_v31, %v1062_v32 }
 0x2c4   : > { %v800_v35 = vadd.f32 %v799_v34, %v2329_v21  ;;  %v801_v37 = vpop.f32.mrb[15].mxu0  ;;  %v804_v42 = vmax.f32 %v796_v29, 0.0 }
 0x2c5   : > { %v802_v39 = vadd.f32 %v801_v37, %v2329_v21  ;;  %2076 = vmatmul.mubr.msk.bf16.vlgmr.msra.gmra.mrb[8].mxu1 %vm538_vm2, %v2357_v53  ;;  %v805_v44 = vmax.f32 %v798_v33, 0.0 }
 0x2c6   : > { %v806_v43 = vmax.f32 %v800_v35, 0.0  ;;  %842 = vmatprep.mubr.bf16.mxu1 %v2214_v1 }
 0x2c7   : > { %v807_v45 = vmax.f32 %v802_v39, 0.0 }
 0x2c8   : > { %v808_v46 = vpack.c.bf16 %v806_v43, %v804_v42  ;;  %v2095_v42 = vcombine.low %v1061_v31, %v1062_v32 }
 0x2c9   : > { %v809_v47 = vpack.c.bf16 %v807_v45, %v805_v44 }
 0x2cb   : > { %810 = vmatprep.subr.bf16.mxu1 %v809_v47 }
 0x2cc   : > { %811 = vmatpush1.bf16.msra.mxu1 %v808_v46 }
 0x2cd   : > { %917 = vmatprep.subr.bf16.mxu1 %v2088_v48 }
 0x2cf   : > { %2082 = vmatmul.mubr.msk.bf16.vlgmr.msra.gmra.mrb[12].mxu1 %vm419_vm0, %v2339_v36 }
 0x2d0   : > { %918 = vmatpush1.bf16.msra.mxu1 %v2087_v49  ;;  %949 = vmatprep.mubr.bf16.mxu1 %v2214_v1 }
 0x2d7   : > { %2089 = vmatmul.mubr.msk.bf16.vlgmr.msra.gmra.mrb[16].mxu1 %vm419_vm0, %v2316_v12 }
 0x2d8   : > { %1049 = vmatprep.mubr.bf16.mxu1 %v2214_v1 }
 0x398   : > { %v739_v56 = vpop.f32.mrb[8].mxu1 }
 0x399   : > { %v740_v57 = vadd.f32 %v739_v56, %v2396_v55  ;;  %v741_v58 = vpop.f32.mrb[9].mxu1 }
 0x39a   : > { %v742_v59 = vadd.f32 %v741_v58, %v2396_v55  ;;  %v743_v60 = vpop.f32.mrb[10].mxu1 }
 0x39b   : > { %v1840_v62 = vrot.slane %v740_v57, 7  ;;  %v744_v63 = vpop.f32.mrb[11].mxu1 }
 0x39c   : > { %v1841_v2 = vrot.slane %v742_v59, 7 }
 0x39d   : > { %v1881_v3 = vsel %vm1880_vm3, %v584_v61, %v1840_v62 }
 0x39e   : > { %v1882_v6 = vsel %vm1880_vm3, %v586_v0, %v1841_v2 }
 0x3a2   : > { %v844_v7 = vpop.f32.mrb[12].mxu1 }
 0x3a3   : > { %v845_v8 = vadd.f32 %v844_v7, %v2347_v38  ;;  %v846_v9 = vpop.f32.mrb[13].mxu1 }
 0x3a4   : > { %v847_v13 = vadd.f32 %v846_v9, %v2347_v38  ;;  %v848_v14 = vpop.f32.mrb[14].mxu1  ;;  %v2102_v9 = vld [vmem:[%s2303_s21 + $0x58] sm:$0xff] }
 0x3a5   : > { %v851_v16 = vmax.f32 %v845_v8, 0.0  ;;  %v849_v10 = vpop.f32.mrb[15].mxu1  ;;  %v2101_v8 = vld [vmem:[%s2303_s21 + $0x50] sm:$0xff] }
 0x3a6   : > { %v852_v17 = vmax.f32 %v847_v13, 0.0 }
 0x3a7   : > { %v853_v18 = vpack.c.bf16 %v851_v16, %v851_v16 }
 0x3a8   : > { %v854_v19 = vpack.c.bf16 %v852_v17, %v852_v17 }
 0x3a9   : > { %v856_v11 = vsel %vm542_vm1, %v853_v18, 0  ;;  %v1217_v18 = vmul.bf16 %v2101_v8, %v2305_v4 }
 0x3aa   : > { %2083 = vmatprep.subr.msk.bf16.mxu0 %vm542_vm1, %v854_v19  ;;  %v951_v20 = vpop.f32.mrb[16].mxu1  ;;  %v1218_v19 = vmul.bf16 %v2102_v9, %v2307_v5 }
 0x3ab   : > { %v952_v22 = vadd.f32 %v951_v20, %v2324_v15  ;;  %862 = vmatpush1.bf16.msra.mxu0 %v856_v11  ;;  %v953_v23 = vpop.f32.mrb[17].mxu1 }
 0x3ac   : > { %v954_v26 = vadd.f32 %v953_v23, %v2324_v15  ;;  %v955_v27 = vpop.f32.mrb[18].mxu1 }
 0x3ad   : > { %v956_v28 = vadd.f32 %v955_v27, %v2329_v21  ;;  %v957_v29 = vpop.f32.mrb[19].mxu1  ;;  %v960_v33 = vmax.f32 %v952_v22, 0.0  ;;  %v2103_v27 = vcombine.low %v1217_v18, %v1218_v19 }
 0x3ae   : > { %v958_v30 = vadd.f32 %v957_v29, %v2329_v21  ;;  %2084 = vmatmul.mubr.msk.bf16.vlgmr.msra.gmra.mrb[16].mxu0 %vm538_vm2, %v2357_v53  ;;  %v961_v35 = vmax.f32 %v954_v26, 0.0  ;;  %v2104_v26 = vcombine.high %v1217_v18, %v1218_v19 }
 0x3af   : > { %v962_v34 = vmax.f32 %v956_v28, 0.0  ;;  %998 = vmatprep.mubr.bf16.mxu0 %v2214_v1 }
 0x3b0   : > { %v963_v37 = vmax.f32 %v958_v30, 0.0 }
 0x3b1   : > { %v964_v39 = vpack.c.bf16 %v962_v34, %v960_v33 }
 0x3b2   : > { %v965_v40 = vpack.c.bf16 %v963_v37, %v961_v35 }
 0x3b4   : > { %966 = vmatprep.subr.bf16.mxu0 %v965_v40 }
 0x3b5   : > { %967 = vmatpush1.bf16.msra.mxu0 %v964_v39 }
 0x3b6   : > { %1073 = vmatprep.subr.bf16.mxu0 %v2096_v41 }
 0x3b8   : > { %2090 = vmatmul.mubr.msk.bf16.vlgmr.msra.gmra.mrb[20].mxu0 %vm419_vm0, %v2339_v36 }
 0x3b9   : > { %1074 = vmatpush1.bf16.msra.mxu0 %v2095_v42  ;;  %1105 = vmatprep.mubr.bf16.mxu0 %v2214_v1 }
 0x3c0   : > { %2097 = vmatmul.mubr.msk.bf16.vlgmr.msra.gmra.mrb[24].mxu0 %vm419_vm0, %v2316_v12 }
 0x3c1   : > { %1205 = vmatprep.mubr.bf16.mxu0 %v2214_v1 }
 0x481   : > { %v895_v43 = vpop.f32.mrb[16].mxu0 }
 0x482   : > { %v896_v44 = vadd.f32 %v895_v43, %v2396_v55  ;;  %v897_v45 = vpop.f32.mrb[17].mxu0 }
 0x483   : > { %v898_v46 = vadd.f32 %v897_v45, %v2396_v55  ;;  %v899_v47 = vpop.f32.mrb[18].mxu0 }
 0x484   : > { %v1846_v48 = vrot.slane %v896_v44, 6  ;;  %v900_v49 = vpop.f32.mrb[19].mxu0 }
 0x485   : > { %v1847_v50 = vrot.slane %v898_v46, 6 }
 0x486   : > { %v1884_v51 = vsel %vm1883_vm4, %v1881_v3, %v1846_v48 }
 0x487   : > { %v1885_v52 = vsel %vm1883_vm4, %v1882_v6, %v1847_v50 }
 0x48b   : > { %v1000_v54 = vpop.f32.mrb[20].mxu0 }
 0x48c   : > { %v1001_v56 = vadd.f32 %v1000_v54, %v2347_v38  ;;  %v1002_v57 = vpop.f32.mrb[21].mxu0 }
 0x48d   : > { %v1003_v58 = vadd.f32 %v1002_v57, %v2347_v38  ;;  %v1004_v59 = vpop.f32.mrb[22].mxu0  ;;  %v2110_v57 = vld [vmem:[%s2303_s21 + $0x68] sm:$0xff] }
 0x48e   : > { %v1007_v60 = vmax.f32 %v1001_v56, 0.0  ;;  %v1005_v61 = vpop.f32.mrb[23].mxu0  ;;  %v2109_v56 = vld [vmem:[%s2303_s21 + $0x60] sm:$0xff] }
 0x48f   : > { %v1008_v62 = vmax.f32 %v1003_v58, 0.0 }
 0x490   : > { %v1009_v63 = vpack.c.bf16 %v1007_v60, %v1007_v60 }
 0x491   : > { %v1010_v0 = vpack.c.bf16 %v1008_v62, %v1008_v62 }
 0x492   : > { %v1012_v2 = vsel %vm542_vm1, %v1009_v63, 0  ;;  %v1373_v63 = vmul.bf16 %v2109_v56, %v2305_v4 }
 0x493   : > { %2091 = vmatprep.subr.msk.bf16.mxu1 %vm542_vm1, %v1010_v0  ;;  %v1107_v3 = vpop.f32.mrb[24].mxu0  ;;  %v1374_v0 = vmul.bf16 %v2110_v57, %v2307_v5 }
 0x494   : > { %v1108_v6 = vadd.f32 %v1107_v3, %v2324_v15  ;;  %1018 = vmatpush1.bf16.msra.mxu1 %v1012_v2  ;;  %v1109_v7 = vpop.f32.mrb[25].mxu0 }
 0x495   : > { %v1110_v13 = vadd.f32 %v1109_v7, %v2324_v15  ;;  %v1111_v14 = vpop.f32.mrb[26].mxu0 }
 0x496   : > { %v1112_v16 = vadd.f32 %v1111_v14, %v2329_v21  ;;  %v1113_v10 = vpop.f32.mrb[27].mxu0  ;;  %v1116_v11 = vmax.f32 %v1108_v6, 0.0  ;;  %v2111_v14 = vcombine.low %v1373_v63, %v1374_v0 }
 0x497   : > { %v1114_v17 = vadd.f32 %v1113_v10, %v2329_v21  ;;  %2092 = vmatmul.mubr.msk.bf16.vlgmr.msra.gmra.mrb[20].mxu1 %vm538_vm2, %v2357_v53  ;;  %v1117_v22 = vmax.f32 %v1110_v13, 0.0  ;;  %v2112_v13 = vcombine.high %v1373_v63, %v1374_v0 }
 0x498   : > { %v1118_v20 = vmax.f32 %v1112_v16, 0.0  ;;  %1154 = vmatprep.mubr.bf16.mxu1 %v2214_v1 }
 0x499   : > { %v1119_v23 = vmax.f32 %v1114_v17, 0.0 }
 0x49a   : > { %v1120_v24 = vpack.c.bf16 %v1118_v20, %v1116_v11 }
 0x49b   : > { %v1121_v25 = vpack.c.bf16 %v1119_v23, %v1117_v22 }
 0x49d   : > { %1122 = vmatprep.subr.bf16.mxu1 %v1121_v25 }
 0x49e   : > { %1123 = vmatpush1.bf16.msra.mxu1 %v1120_v24 }
 0x49f   : > { %1229 = vmatprep.subr.bf16.mxu1 %v2104_v26 }
 0x4a1   : > { %2098 = vmatmul.mubr.msk.bf16.vlgmr.msra.gmra.mrb[24].mxu1 %vm419_vm0, %v2339_v36 }
 0x4a2   : > { %1230 = vmatpush1.bf16.msra.mxu1 %v2103_v27  ;;  %1261 = vmatprep.mubr.bf16.mxu1 %v2214_v1 }
 0x4a9   : > { %2105 = vmatmul.mubr.msk.bf16.vlgmr.msra.gmra.mrb[28].mxu1 %vm419_vm0, %v2316_v12 }
 0x4aa   : > { %1361 = vmatprep.mubr.bf16.mxu1 %v2214_v1 }
 0x56a   : > { %v1051_v28 = vpop.f32.mrb[20].mxu1 }
 0x56b   : > { %v1052_v29 = vadd.f32 %v1051_v28, %v2396_v55  ;;  %v1053_v30 = vpop.f32.mrb[21].mxu1 }
 0x56c   : > { %v1054_v31 = vadd.f32 %v1053_v30, %v2396_v55  ;;  %v1055_v32 = vpop.f32.mrb[22].mxu1 }
 0x56d   : > { %v1852_v33 = vrot.slane %v1052_v29, 5  ;;  %v1056_v34 = vpop.f32.mrb[23].mxu1 }
 0x56e   : > { %v1853_v35 = vrot.slane %v1054_v31, 5 }
 0x56f   : > { %v1887_v37 = vsel %vm1886_vm5, %v1884_v51, %v1852_v33 }
 0x570   : > { %v1888_v39 = vsel %vm1886_vm5, %v1885_v52, %v1853_v35 }
 0x574   : > { %v1156_v40 = vpop.f32.mrb[24].mxu1 }
 0x575   : > { %v1157_v41 = vadd.f32 %v1156_v40, %v2347_v38  ;;  %v1158_v42 = vpop.f32.mrb[25].mxu1 }
 0x576   : > { %v1159_v43 = vadd.f32 %v1158_v42, %v2347_v38  ;;  %v1160_v44 = vpop.f32.mrb[26].mxu1  ;;  %v2118_v42 = vld [vmem:[%s2303_s21 + $0x78] sm:$0xff] }
 0x577   : > { %v1163_v45 = vmax.f32 %v1157_v41, 0.0  ;;  %v1161_v46 = vpop.f32.mrb[27].mxu1  ;;  %v2117_v41 = vld [vmem:[%s2303_s21 + $0x70] sm:$0xff] }
 0x578   : > { %v1164_v47 = vmax.f32 %v1159_v43, 0.0 }
 0x579   : > { %v1165_v48 = vpack.c.bf16 %v1163_v45, %v1163_v45 }
 0x57a   : > { %v1166_v49 = vpack.c.bf16 %v1164_v47, %v1164_v47 }
 0x57b   : > { %v1168_v50 = vsel %vm542_vm1, %v1165_v48, 0  ;;  %v1529_v48 = vmul.bf16 %v2117_v41, %v2305_v4 }
 0x57c   : > { %2099 = vmatprep.subr.msk.bf16.mxu0 %vm542_vm1, %v1166_v49  ;;  %v1263_v51 = vpop.f32.mrb[28].mxu1  ;;  %v1530_v49 = vmul.bf16 %v2118_v42, %v2307_v5 }
 0x57d   : > { %v1264_v52 = vadd.f32 %v1263_v51, %v2324_v15  ;;  %1174 = vmatpush1.bf16.msra.mxu0 %v1168_v50  ;;  %v1265_v54 = vpop.f32.mrb[29].mxu1 }
 0x57e   : > { %v1266_v58 = vadd.f32 %v1265_v54, %v2324_v15  ;;  %v1267_v59 = vpop.f32.mrb[30].mxu1 }
 0x57f   : > { %v1268_v60 = vadd.f32 %v1267_v59, %v2329_v21  ;;  %v1269_v61 = vpop.f32.mrb[31].mxu1  ;;  %v1272_v2 = vmax.f32 %v1264_v52, 0.0  ;;  %v2119_v59 = vcombine.low %v1529_v48, %v1530_v49 }
 0x580   : > { %v1270_v62 = vadd.f32 %v1269_v61, %v2329_v21  ;;  %2100 = vmatmul.mubr.msk.bf16.vlgmr.msra.gmra.mrb[28].mxu0 %vm538_vm2, %v2357_v53  ;;  %v1273_v6 = vmax.f32 %v1266_v58, 0.0  ;;  %v2120_v58 = vcombine.high %v1529_v48, %v1530_v49 }
 0x581   : > { %v1274_v3 = vmax.f32 %v1268_v60, 0.0  ;;  %1310 = vmatprep.mubr.bf16.mxu0 %v2214_v1 }
 0x582   : > { %v1275_v7 = vmax.f32 %v1270_v62, 0.0 }
 0x583   : > { %v1276_v8 = vpack.c.bf16 %v1274_v3, %v1272_v2 }
 0x584   : > { %v1277_v9 = vpack.c.bf16 %v1275_v7, %v1273_v6 }
 0x586   : > { %1278 = vmatprep.subr.bf16.mxu0 %v1277_v9 }
 0x587   : > { %1279 = vmatpush1.bf16.msra.mxu0 %v1276_v8 }
 0x588   : > { %1385 = vmatprep.subr.bf16.mxu0 %v2112_v13 }
 0x58a   : > { %2106 = vmatmul.mubr.msk.bf16.vlgmr.msra.gmra.mrb[32].mxu0 %vm419_vm0, %v2339_v36 }
 0x58b   : > { %1386 = vmatpush1.bf16.msra.mxu0 %v2111_v14  ;;  %1417 = vmatprep.mubr.bf16.mxu0 %v2214_v1 }
 0x592   : > { %2113 = vmatmul.mubr.msk.bf16.vlgmr.msra.gmra.mrb[36].mxu0 %vm419_vm0, %v2316_v12 }
 0x593   : > { %1517 = vmatprep.mubr.bf16.mxu0 %v2214_v1 }
 0x653   : > { %v1207_v16 = vpop.f32.mrb[28].mxu0 }
 0x654   : > { %v1208_v10 = vadd.f32 %v1207_v16, %v2396_v55  ;;  %v1209_v17 = vpop.f32.mrb[29].mxu0 }
 0x655   : > { %v1210_v18 = vadd.f32 %v1209_v17, %v2396_v55  ;;  %v1211_v19 = vpop.f32.mrb[30].mxu0 }
 0x656   : > { %v1858_v11 = vrot.slane %v1208_v10, 4  ;;  %v1212_v20 = vpop.f32.mrb[31].mxu0 }
 0x657   : > { %v1859_v22 = vrot.slane %v1210_v18, 4 }
 0x658   : > { %v1889_v23 = vsel %vm542_vm1, %v1887_v37, %v1858_v11 }
 0x659   : > { %v1890_v24 = vsel %vm542_vm1, %v1888_v39, %v1859_v22 }
 0x65d   : > { %v1312_v25 = vpop.f32.mrb[32].mxu0 }
 0x65e   : > { %v1313_v26 = vadd.f32 %v1312_v25, %v2347_v38  ;;  %v1314_v27 = vpop.f32.mrb[33].mxu0 }
 0x65f   : > { %v1315_v28 = vadd.f32 %v1314_v27, %v2347_v38  ;;  %v1316_v29 = vpop.f32.mrb[34].mxu0  ;;  %v2126_v27 = vld [vmem:[%s2303_s21 + $0x88] sm:$0xff] }
 0x660   : > { %v1319_v30 = vmax.f32 %v1313_v26, 0.0  ;;  %v1317_v31 = vpop.f32.mrb[35].mxu0  ;;  %v2125_v26 = vld [vmem:[%s2303_s21 + $0x80] sm:$0xff] }
 0x661   : > { %v1320_v32 = vmax.f32 %v1315_v28, 0.0 }
 0x662   : > { %v1321_v33 = vpack.c.bf16 %v1319_v30, %v1319_v30 }
 0x663   : > { %v1322_v34 = vpack.c.bf16 %v1320_v32, %v1320_v32 }
 0x664   : > { %v1324_v35 = vsel %vm542_vm1, %v1321_v33, 0  ;;  %v1685_v33 = vmul.bf16 %v2125_v26, %v2305_v4 }
 0x665   : > { %2107 = vmatprep.subr.msk.bf16.mxu1 %vm542_vm1, %v1322_v34  ;;  %v1419_v37 = vpop.f32.mrb[36].mxu0  ;;  %v1686_v34 = vmul.bf16 %v2126_v27, %v2307_v5 }
 0x666   : > { %v1420_v39 = vadd.f32 %v1419_v37, %v2324_v15  ;;  %1330 = vmatpush1.bf16.msra.mxu1 %v1324_v35  ;;  %v1421_v40 = vpop.f32.mrb[37].mxu0 }
 0x667   : > { %v1422_v43 = vadd.f32 %v1421_v40, %v2324_v15  ;;  %v1423_v44 = vpop.f32.mrb[38].mxu0 }
 0x668   : > { %v1424_v45 = vadd.f32 %v1423_v44, %v2329_v21  ;;  %v1425_v46 = vpop.f32.mrb[39].mxu0  ;;  %v1428_v50 = vmax.f32 %v1420_v39, 0.0  ;;  %v2127_v44 = vcombine.low %v1685_v33, %v1686_v34 }
 0x669   : > { %v1426_v47 = vadd.f32 %v1425_v46, %v2329_v21  ;;  %2108 = vmatmul.mubr.msk.bf16.vlgmr.msra.gmra.mrb[32].mxu1 %vm538_vm2, %v2357_v53  ;;  %v1429_v52 = vmax.f32 %v1422_v43, 0.0  ;;  %v2128_v43 = vcombine.high %v1685_v33, %v1686_v34 }
 0x66a   : > { %v1430_v51 = vmax.f32 %v1424_v45, 0.0  ;;  %1466 = vmatprep.mubr.bf16.mxu1 %v2214_v1 }
 0x66b   : > { %v1431_v54 = vmax.f32 %v1426_v47, 0.0 }
 0x66c   : > { %v1432_v56 = vpack.c.bf16 %v1430_v51, %v1428_v50 }
 0x66d   : > { %v1433_v57 = vpack.c.bf16 %v1431_v54, %v1429_v52 }
 0x66f   : > { %1434 = vmatprep.subr.bf16.mxu1 %v1433_v57 }
 0x670   : > { %1435 = vmatpush1.bf16.msra.mxu1 %v1432_v56 }
 0x671   : > { %1541 = vmatprep.subr.bf16.mxu1 %v2120_v58 }
 0x673   : > { %2114 = vmatmul.mubr.msk.bf16.vlgmr.msra.gmra.mrb[36].mxu1 %vm419_vm0, %v2339_v36 }
 0x674   : > { %1542 = vmatpush1.bf16.msra.mxu1 %v2119_v59  ;;  %1573 = vmatprep.mubr.bf16.mxu1 %v2214_v1 }
 0x67b   : > { %2121 = vmatmul.mubr.msk.bf16.vlgmr.msra.gmra.mrb[40].mxu1 %vm419_vm0, %v2316_v12 }
 0x67c   : > { %1673 = vmatprep.mubr.bf16.mxu1 %v2214_v1 }
 0x73c   : > { %v1363_v60 = vpop.f32.mrb[32].mxu1 }
 0x73d   : > { %v1364_v61 = vadd.f32 %v1363_v60, %v2396_v55  ;;  %v1365_v62 = vpop.f32.mrb[33].mxu1 }
 0x73e   : > { %v1366_v63 = vadd.f32 %v1365_v62, %v2396_v55  ;;  %v1367_v0 = vpop.f32.mrb[34].mxu1 }
 0x73f   : > { %v1864_v2 = vrot.slane %v1364_v61, 3  ;;  %v1368_v3 = vpop.f32.mrb[35].mxu1 }
 0x740   : > { %v1865_v6 = vrot.slane %v1366_v63, 3 }
 0x741   : > { %v1892_v7 = vsel %vm1891_vm6, %v1889_v23, %v1864_v2 }
 0x742   : > { %v1893_v8 = vsel %vm1891_vm6, %v1890_v24, %v1865_v6 }
 0x746   : > { %v1468_v9 = vpop.f32.mrb[36].mxu1 }
 0x747   : > { %v1469_v13 = vadd.f32 %v1468_v9, %v2347_v38  ;;  %v1470_v14 = vpop.f32.mrb[37].mxu1 }
 0x748   : > { %v1471_v16 = vadd.f32 %v1470_v14, %v2347_v38  ;;  %v1472_v10 = vpop.f32.mrb[38].mxu1 }
 0x749   : > { %v1475_v17 = vmax.f32 %v1469_v13, 0.0  ;;  %v1473_v18 = vpop.f32.mrb[39].mxu1 }
 0x74a   : > { %v1476_v19 = vmax.f32 %v1471_v16, 0.0 }
 0x74b   : > { %v1477_v11 = vpack.c.bf16 %v1475_v17, %v1475_v17 }
 0x74c   : > { %v1478_v20 = vpack.c.bf16 %v1476_v19, %v1476_v19 }
 0x74d   : > { %v1480_v22 = vsel %vm542_vm1, %v1477_v11, 0 }
 0x74e   : > { %2115 = vmatprep.subr.msk.bf16.mxu0 %vm542_vm1, %v1478_v20  ;;  %v1575_v23 = vpop.f32.mrb[40].mxu1 }
 0x74f   : > { %v1576_v24 = vadd.f32 %v1575_v23, %v2324_v15  ;;  %1486 = vmatpush1.bf16.msra.mxu0 %v1480_v22  ;;  %v1577_v25 = vpop.f32.mrb[41].mxu1 }
 0x750   : > { %v1578_v28 = vadd.f32 %v1577_v25, %v2324_v15  ;;  %v1579_v29 = vpop.f32.mrb[42].mxu1 }
 0x751   : > { %v1580_v30 = vadd.f32 %v1579_v29, %v2329_v21  ;;  %v1581_v31 = vpop.f32.mrb[43].mxu1  ;;  %v1584_v35 = vmax.f32 %v1576_v24, 0.0 }
 0x752   : > { %v1582_v32 = vadd.f32 %v1581_v31, %v2329_v21  ;;  %2116 = vmatmul.mubr.msk.bf16.vlgmr.msra.gmra.mrb[40].mxu0 %vm538_vm2, %v2357_v53  ;;  %v1585_v39 = vmax.f32 %v1578_v28, 0.0 }
 0x753   : > { %v1586_v37 = vmax.f32 %v1580_v30, 0.0  ;;  %1622 = vmatprep.mubr.bf16.mxu0 %v2214_v1 }
 0x754   : > { %v1587_v40 = vmax.f32 %v1582_v32, 0.0 }
 0x755   : > { %v1588_v41 = vpack.c.bf16 %v1586_v37, %v1584_v35 }
 0x756   : > { %v1589_v42 = vpack.c.bf16 %v1587_v40, %v1585_v39 }
 0x758   : > { %1590 = vmatprep.subr.bf16.mxu0 %v1589_v42 }
 0x759   : > { %1591 = vmatpush1.bf16.msra.mxu0 %v1588_v41 }
 0x75a   : > { %1697 = vmatprep.subr.bf16.mxu0 %v2128_v43 }
 0x75c   : > { %2122 = vmatmul.mubr.msk.bf16.vlgmr.msra.gmra.mrb[44].mxu0 %vm419_vm0, %v2339_v36 }
 0x75d   : > { %1698 = vmatpush1.bf16.msra.mxu0 %v2127_v44  ;;  %1729 = vmatprep.mubr.bf16.mxu0 %v2214_v1 }
 0x764   : > { %2129 = vmatmul.mubr.msk.bf16.vlgmr.msra.gmra.mrb[48].mxu0 %vm419_vm0, %v2316_v12 }
 0x765   : > { %1829 = vmatprep.mubr.bf16.mxu0 %v2214_v1 }
 0x825   : > { %v1519_v4 = vpop.f32.mrb[40].mxu0 }
 0x826   : > { %v1520_v5 = vadd.f32 %v1519_v4, %v2396_v55  ;;  %v1521_v45 = vpop.f32.mrb[41].mxu0 }
 0x827   : > { %v1522_v46 = vadd.f32 %v1521_v45, %v2396_v55  ;;  %v1523_v47 = vpop.f32.mrb[42].mxu0 }
 0x828   : > { %v1870_v48 = vrot.slane %v1520_v5, 2  ;;  %v1524_v49 = vpop.f32.mrb[43].mxu0 }
 0x829   : > { %v1871_v50 = vrot.slane %v1522_v46, 2 }
 0x82a   : > { %v1895_v51 = vsel %vm1894_vm7, %v1892_v7, %v1870_v48 }
 0x82b   : > { %v1896_v52 = vsel %vm1894_vm7, %v1893_v8, %v1871_v50 }
 0x82f   : > { %v1624_v54 = vpop.f32.mrb[44].mxu0 }
 0x830   : > { %v1625_v56 = vadd.f32 %v1624_v54, %v2347_v38  ;;  %v1626_v57 = vpop.f32.mrb[45].mxu0 }
 0x831   : > { %v1627_v12 = vadd.f32 %v1626_v57, %v2347_v38  ;;  %v1628_v58 = vpop.f32.mrb[46].mxu0 }
 0x832   : > { %v1631_v59 = vmax.f32 %v1625_v56, 0.0  ;;  %v1629_v60 = vpop.f32.mrb[47].mxu0 }
 0x833   : > { %v1632_v61 = vmax.f32 %v1627_v12, 0.0 }
 0x834   : > { %v1633_v62 = vpack.c.bf16 %v1631_v59, %v1631_v59  ;;  %v1944_v59 = vld [vmem:[%s381_s13 + $0x8] sm:$0x11] }
 0x835   : > { %v1634_v63 = vpack.c.bf16 %v1632_v61, %v1632_v61 }
 0x836   : > { %v1636_v0 = vsel %vm542_vm1, %v1633_v62, 0 }
 0x837   : > { %2123 = vmatprep.subr.msk.bf16.mxu1 %vm542_vm1, %v1634_v63  ;;  %v1731_v2 = vpop.f32.mrb[48].mxu0 }
 0x838   : > { %v1732_v3 = vadd.f32 %v1731_v2, %v2324_v15  ;;  %1642 = vmatpush1.bf16.msra.mxu1 %v1636_v0  ;;  %v1733_v6 = vpop.f32.mrb[49].mxu0 }
 0x839   : > { %v1734_v7 = vadd.f32 %v1733_v6, %v2324_v15  ;;  %v1735_v8 = vpop.f32.mrb[50].mxu0 }
 0x83a   : > { %v1736_v9 = vadd.f32 %v1735_v8, %v2329_v21  ;;  %v1737_v13 = vpop.f32.mrb[51].mxu0  ;;  %v1740_v16 = vmax.f32 %v1732_v3, 0.0 }
 0x83b   : > { %v1738_v14 = vadd.f32 %v1737_v13, %v2329_v21  ;;  %2124 = vmatmul.mubr.msk.bf16.vlgmr.msra.gmra.mrb[44].mxu1 %vm538_vm2, %v2357_v53  ;;  %v1741_v17 = vmax.f32 %v1734_v7, 0.0 }
 0x83c   : > { %v1742_v10 = vmax.f32 %v1736_v9, 0.0  ;;  %1778 = vmatprep.mubr.bf16.mxu1 %v2214_v1 }
 0x83d   : > { %v1743_v18 = vmax.f32 %v1738_v14, 0.0 }
 0x83e   : > { %v1744_v19 = vpack.c.bf16 %v1742_v10, %v1740_v16 }
 0x83f   : > { %v1745_v11 = vpack.c.bf16 %v1743_v18, %v1741_v17 }
 0x841   : > { %1746 = vmatprep.subr.bf16.mxu1 %v1745_v11 }
 0x842   : > { %1747 = vmatpush1.bf16.msra.mxu1 %v1744_v19 }
 0x845   : > { %2130 = vmatmul.mubr.msk.bf16.vlgmr.msra.gmra.mrb[48].mxu1 %vm419_vm0, %v2339_v36 }
 0x90e   : > { %v1675_v15 = vpop.f32.mrb[44].mxu1 }
 0x90f   : > { %v1676_v20 = vadd.f32 %v1675_v15, %v2396_v55  ;;  %v1677_v21 = vpop.f32.mrb[45].mxu1 }
 0x910   : > { %v1678_v22 = vadd.f32 %v1677_v21, %v2396_v55  ;;  %v1679_v23 = vpop.f32.mrb[46].mxu1 }
 0x911   : > { %v1876_v24 = vrot.slane %v1676_v20, 1  ;;  %v1680_v25 = vpop.f32.mrb[47].mxu1 }
 0x912   : > { %v1877_v1 = vrot.slane %v1678_v22, 1 }
 0x913   : > { %v1898_v26 = vsel %vm1897_vm8, %v1895_v51, %v1876_v24 }
 0x914   : > { %v2133_v27 = vmul.f32 -1.442695, %v1898_v26  ;;  %v1899_v28 = vsel %vm1897_vm8, %v1896_v52, %v1877_v1 }
 0x915   : > { %v2134_v29 = vmul.f32 -1.442695, %v1899_v28 }
 0x916   : > { %2174 = vpow2.f32 %v2133_v27 }
 0x917   : > { %2176 = vpow2.f32 %v2134_v29 }
 0x918   : > { %v1780_v30 = vpop.f32.mrb[48].mxu1 }
 0x919   : > { %v1781_v36 = vadd.f32 %v1780_v30, %v2347_v38  ;;  %v1782_v31 = vpop.f32.mrb[49].mxu1 }
 0x91a   : > { %v1783_v32 = vadd.f32 %v1782_v31, %v2347_v38  ;;  %v1784_v33 = vpop.f32.mrb[50].mxu1 }
 0x91b   : > { %v1787_v34 = vmax.f32 %v1781_v36, 0.0  ;;  %v1785_v35 = vpop.f32.mrb[51].mxu1 }
 0x91c   : > { %v1788_v37 = vmax.f32 %v1783_v32, 0.0 }
 0x91d   : > { %v1789_v39 = vpack.c.bf16 %v1787_v34, %v1787_v34 }
 0x91e   : > { %v1790_v40 = vpack.c.bf16 %v1788_v37, %v1788_v37 }
 0x91f   : > { %v1792_v41 = vsel %vm542_vm1, %v1789_v39, 0 }
 0x920   : > { %v2175_v42 = vpop.eup %2174  ;;  %2131 = vmatprep.subr.msk.bf16.mxu0 %vm542_vm1, %v1790_v40 }
 0x921   : > { %v2177_v43 = vpop.eup %2176  ;;  %v1912_v44 = vadd.f32 1.0, %v2175_v42  ;;  %1798 = vmatpush1.bf16.msra.mxu0 %v1792_v41 }
 0x922   : > { %v1913_v4 = vadd.f32 1.0, %v2177_v43 }
 0x923   : > { %2178 = vrcp.f32 %v1912_v44 }
 0x924   : > { %2180 = vrcp.f32 %v1913_v4  ;;  %2132 = vmatmul.mubr.msk.bf16.vlgmr.msra.gmra.mrb[52].mxu0 %vm538_vm2, %v2357_v53 }
 0x92d   : > { %v2179_v38 = vpop.eup %2178 }
 0x92e   : > { %v2181_v5 = vpop.eup %2180 }
 0x92f   : > { %v2143_v45 = vpack.c.bf16 %v2181_v5, %v2179_v38 }
 0x931   : > { %1936 = vst [vmem:[%s381_s13] sm:$0xff] %v2143_v45 }
 0x9f7   : > { %v1831_v46 = vpop.f32.mrb[52].mxu0 }
 0x9f8   : > { %v1832_v47 = vadd.f32 %v1831_v46, %v2396_v55  ;;  %v1833_v48 = vpop.f32.mrb[53].mxu0 }
 0x9f9   : > { %v1834_v49 = vadd.f32 %v1833_v48, %v2396_v55  ;;  %v1835_v50 = vpop.f32.mrb[54].mxu0 }
 0x9fa   : > { %v2135_v51 = vmul.f32 -1.442695, %v1832_v47  ;;  %v1836_v52 = vpop.f32.mrb[55].mxu0 }
 0x9fb   : > { %v2136_v54 = vmul.f32 -1.442695, %v1834_v49 }
 0x9fc   : > { %2182 = vpow2.f32 %v2135_v51 }
 0x9fd   : > { %2184 = vpow2.f32 %v2136_v54 }
 0xa06   : > { %v2183_v53 = vpop.eup %2182 }
 0xa07   : > { %v2185_v56 = vpop.eup %2184  ;;  %v1914_v57 = vadd.f32 1.0, %v2183_v53 }
 0xa08   : > { %v1915_v12 = vadd.f32 1.0, %v2185_v56 }
 0xa09   : > { %2186 = vrcp.f32 %v1914_v57 }
 0xa0a   : > { %2188 = vrcp.f32 %v1915_v12 }
 0xa13   : > { %v2187_v58 = vpop.eup %2186 }
 0xa14   : > { %v2189_v55 = vpop.eup %2188 }
 0xa15   : > { %v2144_v60 = vpack.c.bf16 %v2189_v55, %v2187_v58 }
 0xa17   : > { %v1945_v61 = vsel %vm1943_vm14, %v2144_v60, %v1944_v59 }
 0xa18   : > { %1946 = vst [vmem:[%s381_s13 + $0x8] sm:$0x11] %v1945_v61 }
 0xa19 PF: > { %s20_s9 = sadd.s32 1, %s2212_s9   ;;  %s2568_s29 = smov %s2208_s30 }
 0xa1a   : > { %p17_p5 = scmp.ge.s32.totalorder %s20_s9, 4   ;;  %s2569_s30 = smov %s2571_s7 }
 0xa1c   :  { %19 = sbr.rel (!%p17_p5) target bundleno = 3 (0x3), region = 93 }

</bundles_post_ra>
